<compile_context>
chip_gen: v6e
topology: v6e:2x2x1
jax: 0.10.0
libtpu: 0.0.40
codegen_flags: <defaults>
</compile_context>

<pallas_src>
import functools

import numpy as np
import jax
import jax.numpy as jnp
from jax.experimental import pallas as pl
from jax.experimental.pallas import tpu as pltpu

# ----------------------------- configuration --------------------------------
DIM_NODE = 16     # dim_node_feat
DIM_EDGE = 8      # dim_edge_feat
DIM_TIME = 16     # dim_time
DIM_OUT = 32      # dim_out
NUM_HEAD = 2
N_DST = 16        # number of destination nodes
FANOUT = 8        # sampled neighbours (edges) per destination node
E = N_DST * FANOUT
# Destination-tile cap (per perf review): the per-tile working set is
# O(tile_n * fanout * dim) -- keep it modest so v7x (64 MiB VMEM) and v5e
# (16 MiB default scoped limit) are comfortable.
MAX_TILE_N = 128
LN_EPS = 1e-5


# ------------------------------ Pallas kernel --------------------------------
def _attention_kernel(vdst_ref, vsrc_ref, ef_ref, tf_ref,
                      wqo_ref, wkv_ref, woh_ref, bias_ref, out_ref,
                      *, num_head, fanout, dn, de, dim_out):
  f32 = jnp.float32
  do = dim_out
  dot = lambda a, b: jnp.dot(a, b, preferred_element_type=f32)

  biases = bias_ref[...]                     # (8, 2*do)
  bq = biases[0:1, :do]                      # b_q + ztf @ Wq_t (folded)
  bkv = biases[1:2, :]                       # [b_k | b_v]
  bo = biases[2:3, :do]
  ln_g = biases[3:4, :do]
  ln_b = biases[3:4, do:]

  # Fused destination-side projection: [Q | v_dst @ Wout_n] in one matmul.
  qo = dot(vdst_ref[...], wqo_ref[...])      # (tn, 2*do)
  q = qo[:, :do] + bq                        # (tn, do); zero-time-feat folded in bq
  o_dst = qo[:, do:]                         # (tn, do); w_out's v_dst contribution

  # Fused edge-side projection [K | V] from split inputs (no HBM concat of kin).
  wkv = wkv_ref[...]                         # (dn+de+dt, 2*do)
  kv = (dot(vsrc_ref[...], wkv[:dn, :])
        + dot(ef_ref[...], wkv[dn:dn + de, :])
        + dot(tf_ref[...], wkv[dn + de:, :])
        + bkv)                               # (te, 2*do)

  tn = q.shape[0]
  k3 = kv[:, :do].reshape(tn, fanout, do)    # (tn, F, do)
  v3 = kv[:, do:].reshape(tn, fanout, do)
  dh = do // num_head

  # Block-diagonal attention: each destination only scores its own F edges.
  agg_parts = []
  for h in range(num_head):
    lo = h * dh
    qh = q[:, lo:lo + dh]                    # (tn, dh)
    kh = k3[:, :, lo:lo + dh]                # (tn, F, dh)
    vh = v3[:, :, lo:lo + dh]                # (tn, F, dh)

    s = jnp.sum(qh[:, None, :] * kh, axis=-1)            # (tn, F)
    s = jnp.where(s > 0, s, 0.2 * s)                     # LeakyReLU(0.2)
    m = jnp.max(s, axis=-1, keepdims=True)               # per-destination max
    p_exp = jnp.exp(s - m)
    att = p_exp / jnp.sum(p_exp, axis=-1, keepdims=True)  # exact softmax (f32)
    # att_dropout is identity in eval mode.
    agg_parts.append(jnp.sum(att[:, :, None] * vh, axis=1))   # (tn, dh)
  agg = jnp.concatenate(agg_parts, axis=-1)                   # (tn, do)

  # rst = w_out([agg, v_dst]); v_dst part already computed as o_dst. dropout = id.
  rst = dot(agg, woh_ref[...]) + o_dst + bo
  rst = jnp.maximum(rst, 0.0)                                 # ReLU

  # LayerNorm(dim_out), exact math (no approx rsqrt).
  mu = jnp.mean(rst, axis=-1, keepdims=True)
  var = jnp.mean((rst - mu) ** 2, axis=-1, keepdims=True)
  y = (rst - mu) / jnp.sqrt(var + LN_EPS)
  out_ref[...] = y * ln_g + ln_b


# ------------------------------ host wrapper ---------------------------------
def transformer_attention_layer(v_dst, v_src, edge_feats, dt, params):
  f32 = jnp.float32
  n_dst, dn = v_dst.shape
  e = v_src.shape[0]
  # Kernel assumes fixed fan-out, destination-sorted edges (edge e -> dst e//fanout).
  assert e % n_dst == 0, "edges must be dst-sorted with fixed fan-out"
  fanout = e // n_dst
  de = edge_feats.shape[1]
  dtm = params["time_w"].shape[0]
  do = params["w_q"].shape[0]
  nh = NUM_HEAD
  assert do % nh == 0

  # TODO(synk): TimeEncode's cos() stays in plain-JAX glue (Mosaic cos lowering
  # support varies by version); tiny elementwise preprocessing.
  tw_row = params["time_w"].reshape(1, dtm)
  tb_row = params["time_b"].reshape(1, dtm)
  time_feat = jnp.cos(dt.reshape(e, 1) * tw_row + tb_row)             # (E, dt)
  ztf_row = jnp.cos(jnp.zeros((1, 1), f32) * tw_row + tb_row)         # (1, dt)

  # Fused weights, stored transposed (x @ W form).
  wq_t = params["w_q"].T                                              # (dn+dt, do)
  wo_t = params["w_out"].T                                            # (do+dn, do)
  wqo = jnp.concatenate([wq_t[:dn], wo_t[do:]], axis=1)               # (dn, 2*do)
  wkv = jnp.concatenate([params["w_k"].T, params["w_v"].T], axis=1)   # (dn+de+dt, 2*do)
  woh = wo_t[:do]                                                     # (do, do)

  # Constant zero-time-feature folded into the Q bias.
  bq_fold = params["b_q"] + (ztf_row @ wq_t[dn:])[0]                  # (do,)

  z = jnp.zeros((do,), f32)
  zrow = jnp.zeros((2 * do,), f32)
  bias_stack = jnp.stack([
      jnp.concatenate([bq_fold, z]),
      jnp.concatenate([params["b_k"], params["b_v"]]),
      jnp.concatenate([params["b_out"], z]),
      jnp.concatenate([params["ln_g"], params["ln_b"]]),
      zrow, zrow, zrow, zrow], axis=0)                                # (8, 2*do)

  # Tile selection: cap for VMEM budget, keep >= 2 grid steps when possible so
  # v7x's two TensorCores both get work and DMA overlaps compute.
  tile_n = min(n_dst, MAX_TILE_N)
  while n_dst % tile_n:
    tile_n //= 2
  while n_dst // tile_n < 2 and tile_n % 2 == 0 and tile_n >= 16:
    tile_n //= 2
  assert tile_n >= 8 or tile_n == n_dst
  tile_e = tile_n * fanout
  grid = (n_dst // tile_n,)

  consts = [wqo, wkv, woh, bias_stack]
  in_specs = [
      pl.BlockSpec((tile_n, dn), lambda i: (i, 0)),                   # v_dst
      pl.BlockSpec((tile_e, dn), lambda i: (i, 0)),                   # v_src
      pl.BlockSpec((tile_e, de), lambda i: (i, 0)),                   # edge feats
      pl.BlockSpec((tile_e, dtm), lambda i: (i, 0)),                  # time feat
  ] + [pl.BlockSpec(c.shape, lambda i: (0, 0)) for c in consts]       # VMEM-resident consts

  kernel = functools.partial(_attention_kernel, num_head=nh, fanout=fanout,
                             dn=dn, de=de, dim_out=do)
  return pl.pallas_call(
      kernel,
      out_shape=jax.ShapeDtypeStruct((n_dst, do), f32),
      grid=grid,
      in_specs=in_specs,
      out_specs=pl.BlockSpec((tile_n, do), lambda i: (i, 0)),
      compiler_params=pltpu.CompilerParams(
          dimension_semantics=("parallel",),
          vmem_limit_bytes=32 * 1024 * 1024),
  )(v_dst, v_src, edge_feats, time_feat, *consts)


# --------------------------- deterministic params ----------------------------
def _init_params(key):
  def linear(key, fan_in, fan_out):
    kw, kb = jax.random.split(key)
    bound = 1.0 / np.sqrt(fan_in)
    w = jax.random.uniform(kw, (fan_out, fan_in), jnp.float32, -bound, bound)
    b = jax.random.uniform(kb, (fan_out,), jnp.float32, -bound, bound)
    return w, b

  keys = jax.random.split(key, 4)
  wq, bq = linear(keys[0], DIM_NODE + DIM_TIME, DIM_OUT)
  wk, bk = linear(keys[1], DIM_NODE + DIM_EDGE + DIM_TIME, DIM_OUT)
  wv, bv = linear(keys[2], DIM_NODE + DIM_EDGE + DIM_TIME, DIM_OUT)
  wo, bo = linear(keys[3], DIM_NODE + DIM_OUT, DIM_OUT)
  time_w = (1.0 / 10 ** np.linspace(0, 9, DIM_TIME, dtype=np.float32)
            ).astype(np.float32).reshape(DIM_TIME, 1)
  return dict(
      w_q=wq, b_q=bq, w_k=wk, b_k=bk, w_v=wv, b_v=bv, w_out=wo, b_out=bo,
      time_w=jnp.asarray(time_w), time_b=jnp.zeros((DIM_TIME,), jnp.float32),
      ln_g=jnp.ones((DIM_OUT,), jnp.float32),
      ln_b=jnp.zeros((DIM_OUT,), jnp.float32))


# ---------------------------- pure-JAX reference -----------------------------
def _reference(v_dst, v_src, edge_feats, dt, params, fanout):
  n_dst = v_dst.shape[0]
  e = v_src.shape[0]
  do, h = DIM_OUT, NUM_HEAD
  dh = do // h
  tw = params["time_w"][:, 0]
  tb = params["time_b"]
  time_feat = jnp.cos(dt[:, None] * tw[None, :] + tb[None, :])
  ztf = jnp.cos(jnp.zeros((n_dst, 1), jnp.float32) * tw[None, :] + tb[None, :])
  q = jnp.concatenate([v_dst, ztf], 1) @ params["w_q"].T + params["b_q"]
  edge_dst = jnp.arange(e) // fanout
  qe = q[edge_dst]
  kin = jnp.concatenate([v_src, edge_feats, time_feat], 1)
  k = kin @ params["w_k"].T + params["b_k"]
  v = kin @ params["w_v"].T + params["b_v"]
  qh = qe.reshape(e, h, dh)
  kh = k.reshape(e, h, dh)
  vh = v.reshape(e, h, dh)
  s = jnp.sum(qh * kh, axis=2)
  s = jnp.where(s > 0, s, 0.2 * s)                      # LeakyReLU(0.2)
  att = jax.nn.softmax(s.reshape(n_dst, fanout, h), axis=1).reshape(e, h)
  vw = (vh * att[:, :, None]).reshape(e, do)
  agg = vw.reshape(n_dst, fanout, do).sum(axis=1)
  rst = jnp.concatenate([agg, v_dst], 1) @ params["w_out"].T + params["b_out"]
  rst = jax.nn.relu(rst)
  mu = rst.mean(-1, keepdims=True)
  var = ((rst - mu) ** 2).mean(-1, keepdims=True)
  return (rst - mu) / jnp.sqrt(var + LN_EPS) * params["ln_g"] + params["ln_b"]


# ----------------------------------- main -------------------------------------
if __name__ == "__main__":
  key = jax.random.PRNGKey(0)
  kp, kv, ks, ke, kt = jax.random.split(key, 5)
  params = _init_params(kp)

  v_dst = jax.random.normal(kv, (N_DST, DIM_NODE), jnp.float32)
  v_src = jax.random.normal(ks, (E, DIM_NODE), jnp.float32)
  edge_feats = jax.random.normal(ke, (E, DIM_EDGE), jnp.float32)
  dt = jax.random.uniform(kt, (E,), jnp.float32, 0.0, 100.0)

  out = transformer_attention_layer(v_dst, v_src, edge_feats, dt, params)
  out = jax.block_until_ready(out)

  ref = _reference(v_dst, v_src, edge_feats, dt, params, FANOUT)
  np.testing.assert_allclose(np.asarray(out), np.asarray(ref), rtol=2e-3, atol=2e-3)
  print("KERNEL_OK")
</pallas_src>

<mosaic_0001>
module attributes {stable_mosaic.version = 11 : i64} {
  func.func @_attention_kernel(%arg0: i32, %arg1: memref<8x16xf32, #tpu.memory_space<vmem>>, %arg2: memref<64x16xf32, #tpu.memory_space<vmem>>, %arg3: memref<64x8xf32, #tpu.memory_space<vmem>>, %arg4: memref<64x16xf32, #tpu.memory_space<vmem>>, %arg5: memref<16x64xf32, #tpu.memory_space<vmem>>, %arg6: memref<40x64xf32, #tpu.memory_space<vmem>>, %arg7: memref<32x32xf32, #tpu.memory_space<vmem>>, %arg8: memref<8x64xf32, #tpu.memory_space<vmem>>, %arg9: memref<8x32xf32, #tpu.memory_space<vmem>>) attributes {dimension_semantics = [#tpu.dimension_semantics<parallel>], iteration_bounds = array<i64: 2>, scalar_prefetch = 0 : i64, scratch_operands = 0 : i64, tpu.core_type = #tpu.core_type<tc>, window_params = [{transform_indices = @transform_0, window_bounds = array<i64: 8, 16>}, {transform_indices = @transform_1, window_bounds = array<i64: 64, 16>}, {transform_indices = @transform_2, window_bounds = array<i64: 64, 8>}, {transform_indices = @transform_3, window_bounds = array<i64: 64, 16>}, {pipeline_mode = #tpu.pipeline_mode<synchronous>, transform_indices = @transform_4, window_bounds = array<i64: 16, 64>}, {pipeline_mode = #tpu.pipeline_mode<synchronous>, transform_indices = @transform_5, window_bounds = array<i64: 40, 64>}, {pipeline_mode = #tpu.pipeline_mode<synchronous>, transform_indices = @transform_6, window_bounds = array<i64: 32, 32>}, {pipeline_mode = #tpu.pipeline_mode<synchronous>, transform_indices = @transform_7, window_bounds = array<i64: 8, 64>}, {transform_indices = @transform_8, window_bounds = array<i64: 8, 32>}]} {
    %c0 = arith.constant 0 : index
    %c0_0 = arith.constant 0 : index
    %0 = vector.load %arg8[%c0, %c0_0] : memref<8x64xf32, #tpu.memory_space<vmem>>, vector<8x64xf32>
    %1 = vector.extract_strided_slice %0 {offsets = [0, 0], sizes = [1, 32], strides = [1, 1]} : vector<8x64xf32> to vector<1x32xf32>
    %2 = vector.extract_strided_slice %0 {offsets = [1, 0], sizes = [1, 64], strides = [1, 1]} : vector<8x64xf32> to vector<1x64xf32>
    %3 = vector.extract_strided_slice %0 {offsets = [2, 0], sizes = [1, 32], strides = [1, 1]} : vector<8x64xf32> to vector<1x32xf32>
    %4 = vector.extract_strided_slice %0 {offsets = [3, 0], sizes = [1, 32], strides = [1, 1]} : vector<8x64xf32> to vector<1x32xf32>
    %5 = vector.extract_strided_slice %0 {offsets = [3, 32], sizes = [1, 32], strides = [1, 1]} : vector<8x64xf32> to vector<1x32xf32>
    %c0_1 = arith.constant 0 : index
    %c0_2 = arith.constant 0 : index
    %6 = vector.load %arg1[%c0_1, %c0_2] : memref<8x16xf32, #tpu.memory_space<vmem>>, vector<8x16xf32>
    %c0_3 = arith.constant 0 : index
    %c0_4 = arith.constant 0 : index
    %7 = vector.load %arg5[%c0_3, %c0_4] : memref<16x64xf32, #tpu.memory_space<vmem>>, vector<16x64xf32>
    %cst = arith.constant dense<0.000000e+00> : vector<8x64xf32>
    %8 = tpu.matmul %6, %7, %cst {dimension_numbers = #tpu.dot_dimension_numbers<[1], [0], [0], [1], [0, 0, 1, 1], [], []>} : vector<8x16xf32>, vector<16x64xf32>, vector<8x64xf32> -> vector<8x64xf32>
    %9 = vector.extract_strided_slice %8 {offsets = [0, 0], sizes = [8, 32], strides = [1, 1]} : vector<8x64xf32> to vector<8x32xf32>
    %10 = vector.broadcast %1 : vector<1x32xf32> to vector<8x32xf32>
    %11 = arith.addf %9, %10 : vector<8x32xf32>
    %12 = vector.extract_strided_slice %8 {offsets = [0, 32], sizes = [8, 32], strides = [1, 1]} : vector<8x64xf32> to vector<8x32xf32>
    %c0_5 = arith.constant 0 : index
    %c0_6 = arith.constant 0 : index
    %13 = vector.load %arg6[%c0_5, %c0_6] : memref<40x64xf32, #tpu.memory_space<vmem>>, vector<40x64xf32>
    %c0_7 = arith.constant 0 : index
    %c0_8 = arith.constant 0 : index
    %14 = vector.load %arg2[%c0_7, %c0_8] : memref<64x16xf32, #tpu.memory_space<vmem>>, vector<64x16xf32>
    %15 = vector.extract_strided_slice %13 {offsets = [0, 0], sizes = [16, 64], strides = [1, 1]} : vector<40x64xf32> to vector<16x64xf32>
    %cst_9 = arith.constant dense<0.000000e+00> : vector<64x64xf32>
    %16 = tpu.matmul %14, %15, %cst_9 {dimension_numbers = #tpu.dot_dimension_numbers<[1], [0], [0], [1], [0, 0, 1, 1], [], []>} : vector<64x16xf32>, vector<16x64xf32>, vector<64x64xf32> -> vector<64x64xf32>
    %c0_10 = arith.constant 0 : index
    %c0_11 = arith.constant 0 : index
    %17 = vector.load %arg3[%c0_10, %c0_11] : memref<64x8xf32, #tpu.memory_space<vmem>>, vector<64x8xf32>
    %18 = vector.extract_strided_slice %13 {offsets = [16, 0], sizes = [8, 64], strides = [1, 1]} : vector<40x64xf32> to vector<8x64xf32>
    %cst_12 = arith.constant dense<0.000000e+00> : vector<64x64xf32>
    %19 = tpu.matmul %17, %18, %cst_12 {dimension_numbers = #tpu.dot_dimension_numbers<[1], [0], [0], [1], [0, 0, 1, 1], [], []>} : vector<64x8xf32>, vector<8x64xf32>, vector<64x64xf32> -> vector<64x64xf32>
    %20 = arith.addf %16, %19 : vector<64x64xf32>
    %c0_13 = arith.constant 0 : index
    %c0_14 = arith.constant 0 : index
    %21 = vector.load %arg4[%c0_13, %c0_14] : memref<64x16xf32, #tpu.memory_space<vmem>>, vector<64x16xf32>
    %22 = vector.extract_strided_slice %13 {offsets = [24, 0], sizes = [16, 64], strides = [1, 1]} : vector<40x64xf32> to vector<16x64xf32>
    %cst_15 = arith.constant dense<0.000000e+00> : vector<64x64xf32>
    %23 = tpu.matmul %21, %22, %cst_15 {dimension_numbers = #tpu.dot_dimension_numbers<[1], [0], [0], [1], [0, 0, 1, 1], [], []>} : vector<64x16xf32>, vector<16x64xf32>, vector<64x64xf32> -> vector<64x64xf32>
    %24 = arith.addf %20, %23 : vector<64x64xf32>
    %25 = vector.broadcast %2 : vector<1x64xf32> to vector<64x64xf32>
    %26 = arith.addf %24, %25 : vector<64x64xf32>
    %27 = vector.extract_strided_slice %26 {offsets = [0, 0], sizes = [64, 32], strides = [1, 1]} : vector<64x64xf32> to vector<64x32xf32>
    %28 = vector.shape_cast %27 : vector<64x32xf32> to vector<8x8x32xf32>
    %29 = vector.extract_strided_slice %26 {offsets = [0, 32], sizes = [64, 32], strides = [1, 1]} : vector<64x64xf32> to vector<64x32xf32>
    %30 = vector.shape_cast %29 : vector<64x32xf32> to vector<8x8x32xf32>
    %31 = vector.extract_strided_slice %11 {offsets = [0, 0], sizes = [8, 16], strides = [1, 1]} : vector<8x32xf32> to vector<8x16xf32>
    %32 = vector.extract_strided_slice %28 {offsets = [0, 0, 0], sizes = [8, 8, 16], strides = [1, 1, 1]} : vector<8x8x32xf32> to vector<8x8x16xf32>
    %33 = vector.extract_strided_slice %30 {offsets = [0, 0, 0], sizes = [8, 8, 16], strides = [1, 1, 1]} : vector<8x8x32xf32> to vector<8x8x16xf32>
    %34 = vector.shape_cast %31 : vector<8x16xf32> to vector<8x1x16xf32>
    %35 = vector.broadcast %34 : vector<8x1x16xf32> to vector<8x8x16xf32>
    %36 = arith.mulf %35, %32 : vector<8x8x16xf32>
    %cst_16 = arith.constant dense<0.000000e+00> : vector<8x8xf32>
    %37 = vector.multi_reduction <add>, %36, %cst_16 [2] : vector<8x8x16xf32> to vector<8x8xf32>
    %cst_17 = arith.constant 0.000000e+00 : f32
    %38 = vector.broadcast %cst_17 : f32 to vector<8x8xf32>
    %39 = arith.cmpf ogt, %37, %38 : vector<8x8xf32>
    %cst_18 = arith.constant 2.000000e-01 : f32
    %40 = vector.broadcast %cst_18 : f32 to vector<8x8xf32>
    %41 = arith.mulf %40, %37 : vector<8x8xf32>
    %42 = arith.select %39, %37, %41 : vector<8x8xi1>, vector<8x8xf32>
    %cst_19 = arith.constant dense<0xFF800000> : vector<8xf32>
    %43 = vector.multi_reduction <maximumf>, %42, %cst_19 [1] : vector<8x8xf32> to vector<8xf32>
    %44 = vector.shape_cast %43 : vector<8xf32> to vector<8x1xf32>
    %45 = vector.broadcast %44 : vector<8x1xf32> to vector<8x8xf32>
    %46 = arith.subf %42, %45 : vector<8x8xf32>
    %47 = math.exp %46 : vector<8x8xf32>
    %cst_20 = arith.constant dense<0.000000e+00> : vector<8xf32>
    %48 = vector.multi_reduction <add>, %47, %cst_20 [1] : vector<8x8xf32> to vector<8xf32>
    %49 = vector.shape_cast %48 : vector<8xf32> to vector<8x1xf32>
    %50 = vector.broadcast %49 : vector<8x1xf32> to vector<8x8xf32>
    %51 = arith.divf %47, %50 : vector<8x8xf32>
    %52 = vector.shape_cast %51 : vector<8x8xf32> to vector<8x8x1xf32>
    %53 = vector.broadcast %52 : vector<8x8x1xf32> to vector<8x8x16xf32>
    %54 = arith.mulf %53, %33 : vector<8x8x16xf32>
    %cst_21 = arith.constant dense<0.000000e+00> : vector<8x16xf32>
    %55 = vector.multi_reduction <add>, %54, %cst_21 [1] : vector<8x8x16xf32> to vector<8x16xf32>
    %56 = vector.extract_strided_slice %11 {offsets = [0, 16], sizes = [8, 16], strides = [1, 1]} : vector<8x32xf32> to vector<8x16xf32>
    %57 = vector.extract_strided_slice %28 {offsets = [0, 0, 16], sizes = [8, 8, 16], strides = [1, 1, 1]} : vector<8x8x32xf32> to vector<8x8x16xf32>
    %58 = vector.extract_strided_slice %30 {offsets = [0, 0, 16], sizes = [8, 8, 16], strides = [1, 1, 1]} : vector<8x8x32xf32> to vector<8x8x16xf32>
    %59 = vector.shape_cast %56 : vector<8x16xf32> to vector<8x1x16xf32>
    %60 = vector.broadcast %59 : vector<8x1x16xf32> to vector<8x8x16xf32>
    %61 = arith.mulf %60, %57 : vector<8x8x16xf32>
    %cst_22 = arith.constant dense<0.000000e+00> : vector<8x8xf32>
    %62 = vector.multi_reduction <add>, %61, %cst_22 [2] : vector<8x8x16xf32> to vector<8x8xf32>
    %cst_23 = arith.constant 0.000000e+00 : f32
    %63 = vector.broadcast %cst_23 : f32 to vector<8x8xf32>
    %64 = arith.cmpf ogt, %62, %63 : vector<8x8xf32>
    %cst_24 = arith.constant 2.000000e-01 : f32
    %65 = vector.broadcast %cst_24 : f32 to vector<8x8xf32>
    %66 = arith.mulf %65, %62 : vector<8x8xf32>
    %67 = arith.select %64, %62, %66 : vector<8x8xi1>, vector<8x8xf32>
    %cst_25 = arith.constant dense<0xFF800000> : vector<8xf32>
    %68 = vector.multi_reduction <maximumf>, %67, %cst_25 [1] : vector<8x8xf32> to vector<8xf32>
    %69 = vector.shape_cast %68 : vector<8xf32> to vector<8x1xf32>
    %70 = vector.broadcast %69 : vector<8x1xf32> to vector<8x8xf32>
    %71 = arith.subf %67, %70 : vector<8x8xf32>
    %72 = math.exp %71 : vector<8x8xf32>
    %cst_26 = arith.constant dense<0.000000e+00> : vector<8xf32>
    %73 = vector.multi_reduction <add>, %72, %cst_26 [1] : vector<8x8xf32> to vector<8xf32>
    %74 = vector.shape_cast %73 : vector<8xf32> to vector<8x1xf32>
    %75 = vector.broadcast %74 : vector<8x1xf32> to vector<8x8xf32>
    %76 = arith.divf %72, %75 : vector<8x8xf32>
    %77 = vector.shape_cast %76 : vector<8x8xf32> to vector<8x8x1xf32>
    %78 = vector.broadcast %77 : vector<8x8x1xf32> to vector<8x8x16xf32>
    %79 = arith.mulf %78, %58 : vector<8x8x16xf32>
    %cst_27 = arith.constant dense<0.000000e+00> : vector<8x16xf32>
    %80 = vector.multi_reduction <add>, %79, %cst_27 [1] : vector<8x8x16xf32> to vector<8x16xf32>
    %81 = tpu.concatenate %55, %80 in 1 : vector<8x16xf32>, vector<8x16xf32> -> vector<8x32xf32>
    %c0_28 = arith.constant 0 : index
    %c0_29 = arith.constant 0 : index
    %82 = vector.load %arg7[%c0_28, %c0_29] : memref<32x32xf32, #tpu.memory_space<vmem>>, vector<32x32xf32>
    %cst_30 = arith.constant dense<0.000000e+00> : vector<8x32xf32>
    %83 = tpu.matmul %81, %82, %cst_30 {dimension_numbers = #tpu.dot_dimension_numbers<[1], [0], [0], [1], [0, 0, 1, 1], [], []>} : vector<8x32xf32>, vector<32x32xf32>, vector<8x32xf32> -> vector<8x32xf32>
    %84 = arith.addf %83, %12 : vector<8x32xf32>
    %85 = vector.broadcast %3 : vector<1x32xf32> to vector<8x32xf32>
    %86 = arith.addf %84, %85 : vector<8x32xf32>
    %cst_31 = arith.constant 0.000000e+00 : f32
    %87 = vector.broadcast %cst_31 : f32 to vector<8x32xf32>
    %88 = arith.maximumf %86, %87 : vector<8x32xf32>
    %cst_32 = arith.constant dense<0.000000e+00> : vector<8xf32>
    %89 = vector.multi_reduction <add>, %88, %cst_32 [1] : vector<8x32xf32> to vector<8xf32>
    %90 = vector.shape_cast %89 : vector<8xf32> to vector<8x1xf32>
    %cst_33 = arith.constant 3.200000e+01 : f32
    %91 = vector.broadcast %cst_33 : f32 to vector<8x1xf32>
    %92 = arith.divf %90, %91 : vector<8x1xf32>
    %93 = vector.broadcast %92 : vector<8x1xf32> to vector<8x32xf32>
    %94 = arith.subf %88, %93 : vector<8x32xf32>
    %95 = arith.mulf %94, %94 : vector<8x32xf32>
    %cst_34 = arith.constant dense<0.000000e+00> : vector<8xf32>
    %96 = vector.multi_reduction <add>, %95, %cst_34 [1] : vector<8x32xf32> to vector<8xf32>
    %97 = vector.shape_cast %96 : vector<8xf32> to vector<8x1xf32>
    %cst_35 = arith.constant 3.200000e+01 : f32
    %98 = vector.broadcast %cst_35 : f32 to vector<8x1xf32>
    %99 = arith.divf %97, %98 : vector<8x1xf32>
    %100 = vector.broadcast %92 : vector<8x1xf32> to vector<8x32xf32>
    %101 = arith.subf %88, %100 : vector<8x32xf32>
    %cst_36 = arith.constant 9.99999974E-6 : f32
    %102 = vector.broadcast %cst_36 : f32 to vector<8x1xf32>
    %103 = arith.addf %99, %102 : vector<8x1xf32>
    %104 = math.sqrt %103 : vector<8x1xf32>
    %105 = vector.broadcast %104 : vector<8x1xf32> to vector<8x32xf32>
    %106 = arith.divf %101, %105 : vector<8x32xf32>
    %107 = vector.broadcast %4 : vector<1x32xf32> to vector<8x32xf32>
    %108 = arith.mulf %106, %107 : vector<8x32xf32>
    %109 = vector.broadcast %5 : vector<1x32xf32> to vector<8x32xf32>
    %110 = arith.addf %108, %109 : vector<8x32xf32>
    %c0_37 = arith.constant 0 : index
    %c0_38 = arith.constant 0 : index
    %111 = vector.load %arg9[%c0_37, %c0_38] : memref<8x32xf32, #tpu.memory_space<vmem>>, vector<8x32xf32>
    tpu.vector_store %arg9[%c0_37, %c0_38], %110 {strides = array<i32>} : memref<8x32xf32, #tpu.memory_space<vmem>>, vector<8x32xf32>,
    return
  }
  func.func @transform_0(%arg0: i32) -> (i32, i32) {
    %c0_i32 = arith.constant 0 : i32
    %c0_i32_0 = arith.constant 0 : i32
    return %arg0, %c0_i32 : i32, i32
  }
  func.func @transform_1(%arg0: i32) -> (i32, i32) {
    %c0_i32 = arith.constant 0 : i32
    %c0_i32_0 = arith.constant 0 : i32
    return %arg0, %c0_i32 : i32, i32
  }
  func.func @transform_2(%arg0: i32) -> (i32, i32) {
    %c0_i32 = arith.constant 0 : i32
    %c0_i32_0 = arith.constant 0 : i32
    return %arg0, %c0_i32 : i32, i32
  }
  func.func @transform_3(%arg0: i32) -> (i32, i32) {
    %c0_i32 = arith.constant 0 : i32
    %c0_i32_0 = arith.constant 0 : i32
    return %arg0, %c0_i32 : i32, i32
  }
  func.func @transform_4(%arg0: i32) -> (i32, i32) {
    %c0_i32 = arith.constant 0 : i32
    %c0_i32_0 = arith.constant 0 : i32
    %c0_i32_1 = arith.constant 0 : i32
    return %c0_i32, %c0_i32_0 : i32, i32
  }
  func.func @transform_5(%arg0: i32) -> (i32, i32) {
    %c0_i32 = arith.constant 0 : i32
    %c0_i32_0 = arith.constant 0 : i32
    %c0_i32_1 = arith.constant 0 : i32
    return %c0_i32, %c0_i32_0 : i32, i32
  }
  func.func @transform_6(%arg0: i32) -> (i32, i32) {
    %c0_i32 = arith.constant 0 : i32
    %c0_i32_0 = arith.constant 0 : i32
    %c0_i32_1 = arith.constant 0 : i32
    return %c0_i32, %c0_i32_0 : i32, i32
  }
  func.func @transform_7(%arg0: i32) -> (i32, i32) {
    %c0_i32 = arith.constant 0 : i32
    %c0_i32_0 = arith.constant 0 : i32
    %c0_i32_1 = arith.constant 0 : i32
    return %c0_i32, %c0_i32_0 : i32, i32
  }
  func.func @transform_8(%arg0: i32) -> (i32, i32) {
    %c0_i32 = arith.constant 0 : i32
    %c0_i32_0 = arith.constant 0 : i32
    return %arg0, %c0_i32 : i32, i32
  }
}

</mosaic_0001>

<bundles_post_ra>
// kernel: tpu_custom_call.1
= control target key start
LH: loop header
LB: loop body
LE: loop exit
PB: predicated region body
PF: predicated region fallthrough
CT: control target
= control target key end

     0   :  { %13 = vsyncpa [#allocation3], 0  ;;  %s3038_s0 = inlined_call_operand.vmem [shape: f32[16,16], index: 0, kind: input, shape index: {}]   ;;  %s3039_s1 = inlined_call_operand.vmem [shape: f32[128,16], index: 1, kind: input, shape index: {}]   ;;  %s3040_s2 = inlined_call_operand.vmem [shape: f32[128,8], index: 2, kind: input, shape index: {}]   ;;  %s3041_s3 = inlined_call_operand.vmem [shape: f32[128,16], index: 3, kind: input, shape index: {}]   ;;  %s3042_s4 = inlined_call_operand.vmem [shape: f32[16,64], index: 4, kind: input, shape index: {}]   ;;  %s3043_s5 = inlined_call_operand.vmem [shape: f32[40,64], index: 5, kind: input, shape index: {}]   ;;  %s3044_s6 = inlined_call_operand.vmem [shape: f32[32,32], index: 6, kind: input, shape index: {}]   ;;  %s3045_s7 = inlined_call_operand.vmem [shape: f32[8,64], index: 7, kind: input, shape index: {}]   ;;  %s3046_s8 = inlined_call_operand.hbm [shape: f32[16,32], index: 8, kind: output, shape index: {}]  }
   0x1   :  { %15 = vsyncpa [#allocation3 + $0x1], 0  ;;  %s2467_s27 = smov 0   ;;  %s2469_s28 = smov 0  }
   0x2   :  { %s2471_s29 = smov 0   ;;  %s2473_s30 = smov 0  }
   0x3 LB: > { %s2488_s9 = sadd.s32 4294967295, %s2413_s30   ;;  %s2094_s10 = sadd.s32 4294967294, %s2413_s30   ;;  %s2413_s30 = sphi %s2473_s30, %s3052_s30   ;;  %s2409_s29 = sphi %s2471_s29, %s3051_s29   ;;  %s2405_s28 = sphi %s2469_s28, %s3050_s28   ;;  %s2401_s27 = sphi %s2467_s27, %s3049_s27  }
   0x4   : > { %s2492_s11 = sadd.s32 1, %s2413_s30   ;;  %s216_s12 = sadd.s32 1, %s2409_s29 }
   0x5   : > { %s213_s13 = ssub.s32 %s2413_s30, %s2492_s11  ;;  %p226_p0 = scmp.ne.s32.totalorder %s2409_s29, %s2405_s28 }
   0x6   : > { %p214_p1 = scmp.eq.s32.totalorder %s213_s13, 0  ;;  %p227_p2 = scmp.eq.s32.totalorder %s2488_s9, 1 }
   0x7   : > { %p232_p3 = scmp.ne.s32.totalorder %s2405_s28, %s2401_s27  ;;  %p233_p4 = scmp.eq.s32.totalorder %s2094_s10, 1 }
   0x8   : > { %s2503_s14 = scalar_select %p214_p1, %s2409_s29, %s216_s12  }
   0x9   : > { %p2505_p5 = por %p227_p2, %p226_p0  ;;  %p2509_p6 = por %p233_p4, %p232_p3 }
   0xa   : > { %p2097_p7 = scmp.ge.s32.totalorder %s2413_s30, 1  ;;  %p297_p8 = scmp.lt.s32.totalorder %s2413_s30, 3 }
   0xc   : > { %p298_p9 = pnand %p2097_p7, %p297_p8 }
   0xd   : > { %p345_p10 = scmp.lt.s32.totalorder (!%p298_p9), %s2488_s9, 1  ;;  %s2100_s23 = sshll.u32 (!%p298_p9), %s2488_s9, 3 }
   0xe   : > { %301 = sbr.rel (%p298_p9) target bundleno = 1820 (0x71c), region = 52  ;;  %p350_p11 = scmp.lt.s32.totalorder (!%p298_p9), %s2100_s23, 15 }
   0xf   : > { %s2418_s24 = smov (!%p298_p9), 112   ;;  %s2133_s25 = sshll.u32 (!%p298_p9), %s2488_s9, 7 }
  0x13   : > { %v370_v0 = vld [vmem:[%s3042_s4 + $0x8] sm:$0xff]  ;;  %v452_v1 = vld [vmem:[%s3043_s5 + $0x10] sm:$0xff]  ;;  %v2415_v2 = vmov 0.0   ;;  %v369_v3 = vld [vmem:[%s3042_s4] sm:$0xff]  ;;  %vm2416_vm0 = vmmov 0   ;;  %s346_s26 = scalar_select %p345_p10, %s2488_s9, 1  ;;  %v445_v33 = vlaneseq }
  0x14   : > { %2173 = vmatprep.subr.mxu0 %v2415_v2  ;;  %2177 = vmatprep.mubr.msk.f32.mxu0 %vm2416_vm0, %v2415_v2  ;;  %v454_v4 = vld [vmem:[%s3043_s5 + $0x20] sm:$0xff]  ;;  %v451_v5 = vld [vmem:[%s3043_s5 + $0x8] sm:$0xff]  ;;  %vm371_vm1 = vcmask 130048   ;;  %s3054_s23 = smov (!%p350_p11, %s2100_s23), 15  ;;  %vm471_vm2 = vcmask 64512   ;;  %v453_v13 = vld [vmem:[%s3043_s5 + $0x18] sm:$0xff] }
  0x15   : > { %2174 = vmatpush3.msra.mxu0 %v370_v0  ;;  %2180 = vmatprep.subr.mxu1 %v452_v1  ;;  %s2099_s13 = sshll.u32 %s346_s26, 3  ;;  %v450_v7 = vld [vmem:[%s3043_s5] sm:$0xff]  ;;  %s2544_s22 = sshll.u32 %s3054_s23, 3  ;;  %v2609_v34 = vshrl.u32 %v445_v33, 7  ;;  %v2417_v36 = vmov 1966171168  }
  0x16   : > { %2175 = vmatprep.subr.mxu0 %v2415_v2  ;;  %2181 = vmatpush3.msra.mxu1 %v452_v1  ;;  %s348_s19 = scalar_lea.vmem %s3038_s0, %s2099_s13  ;;  %s2550_s26 = scalar_lea.vmem %s3040_s2, %s2544_s22  ;;  %v890_v37 = vunpack.c.l.s4 %v2417_v36  ;;  %v367_v38 = vld [vmem:[%s3045_s7] sm:$0xff]  ;;  %vm1075_vm9 = vcmask 1041409   ;;  %vm1077_vm11 = vcmask 1042434   ;;  %vm1079_vm12 = vcmask 1043459  }
  0x17   : > { %2176 = vmatpush3.msra.mxu0 %v369_v3  ;;  %2210 = vmatprep.subr.mxu1 %v454_v4  ;;  %v368_v6 = vld [vmem:[%s348_s19] sm:$0xff]  ;;  %s2556_s13 = scalar_lea.vmem %s3039_s1, %s2544_s22  ;;  %v464_v9 = vld [vmem:[%s2550_s26 + $0x8] sm:$0xff]  ;;  %v465_v12 = vld [vmem:[%s2550_s26 + $0x10] sm:$0xff]  ;;  %s365_s20 = scalar_lea.vmem %s3041_s3, %s2544_s22  ;;  %v2612_v35 = vsub.s32 0, %v2609_v34  ;;  %v2623_v57 = vsub.s32 1, %v2609_v34  ;;  %vm1081_vm13 = vcmask 1044484  }
  0x18   : > { %2194 = vmatprep.subr.mxu0 %v451_v5  ;;  %2178 = vmatmul.mubr.msk.f32.vlgmr.msra.gmra.mxu0 %vm371_vm1, %v368_v6  ;;  %v463_v8 = vld [vmem:[%s2550_s26] sm:$0xff]  ;;  %v456_v11 = vld [vmem:[%s2556_s13 + $0x8] sm:$0xff]  ;;  %v457_v14 = vld [vmem:[%s2556_s13 + $0x10] sm:$0xff]  ;;  %v891_v41 = vunpack.c.0.s8 %v890_v37  ;;  %vm1083_vm14 = vcmask 1045509   ;;  %s2420_s19 = smov 96   ;;  %s342_s22 = sand.u32 1, %s2405_s28  }
  0x19   : > { %2195 = vmatpush3.msra.mxu0 %v451_v5  ;;  %v455_v10 = vld [vmem:[%s2556_s13] sm:$0xff]  ;;  %2182 = vmatprep.mubr.msk.f32.mxu1 %vm471_vm2, %v463_v8  ;;  %v466_v15 = vld [vmem:[%s2550_s26 + $0x18] sm:$0xff]  ;;  %v468_v19 = vld [vmem:[%s2550_s26 + $0x28] sm:$0xff]  ;;  %v448_v40 = vrot.slane %v367_v38, %v2612_v35  ;;  %v878_v63 = vrot.slane %v367_v38, %v2623_v57  ;;  %s1997_s23 = scalar_lea.hbm %s3046_s8, %s2133_s25  ;;  %s1986_s17 = scalar_lea.sflag [#allocation3], %s342_s22 }
  0x1a   : > { %2196 = vmatprep.subr.mxu0 %v450_v7  ;;  %2198 = vmatprep.mubr.msk.f32.mxu0 %vm371_vm1, %v455_v10  ;;  %v458_v16 = vld [vmem:[%s2556_s13 + $0x18] sm:$0xff]  ;;  %v467_v17 = vld [vmem:[%s2550_s26 + $0x20] sm:$0xff]  ;;  %v460_v20 = vld [vmem:[%s2556_s13 + $0x28] sm:$0xff]  ;;  %v894_v46 = vsub.s32 %v891_v41, %v2609_v34 }
  0x1b   : > { %2197 = vmatpush3.msra.mxu0 %v450_v7  ;;  %2183 = vmatmul.mubr.msk.f32.vlgmr.msra.gmra.mxu1 %vm471_vm2, %v464_v9  ;;  %v459_v18 = vld [vmem:[%s2556_s13 + $0x20] sm:$0xff]  ;;  %v469_v21 = vld [vmem:[%s2550_s26 + $0x30] sm:$0xff]  ;;  %v470_v23 = vld [vmem:[%s2550_s26 + $0x38] sm:$0xff] }
  0x1c   : > { %2199 = vmatmul.mubr.msk.f32.vlgmr.msra.gmra.mxu0 %vm371_vm1, %v456_v11  ;;  %2211 = vmatpush3.msra.mxu1 %v454_v4  ;;  %v461_v22 = vld [vmem:[%s2556_s13 + $0x30] sm:$0xff]  ;;  %v462_v24 = vld [vmem:[%s2556_s13 + $0x38] sm:$0xff]  ;;  %v730_v25 = vld [vmem:[%s365_s20] sm:$0xff] }
  0x1d   : > { %2185 = vmatprep.mubr.msk.f32.mxu1 %vm471_vm2, %v465_v12  ;;  %2201 = vmatprep.mubr.msk.f32.mxu0 %vm371_vm1, %v457_v14  ;;  %v731_v26 = vld [vmem:[%s365_s20 + $0x8] sm:$0xff]  ;;  %v732_v27 = vld [vmem:[%s365_s20 + $0x10] sm:$0xff]  ;;  %v733_v28 = vld [vmem:[%s365_s20 + $0x18] sm:$0xff] }
  0x1e   : > { %2212 = vmatprep.subr.mxu1 %v453_v13  ;;  %2226 = vmatprep.subr.mxu0 %v2415_v2  ;;  %v734_v29 = vld [vmem:[%s365_s20 + $0x20] sm:$0xff]  ;;  %v735_v30 = vld [vmem:[%s365_s20 + $0x28] sm:$0xff]  ;;  %v736_v31 = vld [vmem:[%s365_s20 + $0x30] sm:$0xff] }
  0x1f   : > { %2213 = vmatpush3.msra.mxu1 %v453_v13  ;;  %v737_v32 = vld [vmem:[%s365_s20 + $0x38] sm:$0xff] }
  0x20   : > { %2186 = vmatmul.mubr.msk.f32.gmra.mxu1 %vm471_vm2, %v466_v15  ;;  %2202 = vmatmul.mubr.msk.f32.gmra.mxu0 %vm371_vm1, %v458_v16 }
  0x21   : > { %2188 = vmatprep.mubr.msk.f32.mxu1 %vm471_vm2, %v467_v17  ;;  %2204 = vmatprep.mubr.msk.f32.mxu0 %vm371_vm1, %v459_v18 }
  0x24   : > { %2189 = vmatmul.mubr.msk.f32.gmra.mxu1 %vm471_vm2, %v468_v19  ;;  %2205 = vmatmul.mubr.msk.f32.gmra.mxu0 %vm371_vm1, %v460_v20 }
  0x25   : > { %2191 = vmatprep.mubr.msk.f32.mxu1 %vm471_vm2, %v469_v21  ;;  %2207 = vmatprep.mubr.msk.f32.mxu0 %vm371_vm1, %v461_v22 }
  0x28   : > { %2192 = vmatmul.mubr.msk.f32.gmra.mxu1 %vm471_vm2, %v470_v23  ;;  %2208 = vmatmul.mubr.msk.f32.gmra.mxu0 %vm371_vm1, %v462_v24 }
  0x29   : > { %2214 = vmatprep.mubr.msk.f32.mxu1 %vm371_vm1, %v730_v25  ;;  %2234 = vmatprep.mubr.msk.f32.mxu0 %vm2416_vm0, %v2415_v2  ;;  %vm1085_vm0 = vcmask 1046534  }
  0x2c   : > { %2215 = vmatmul.mubr.msk.f32.vlgmr.msra.gmra.mxu1 %vm371_vm1, %v731_v26 }
  0x2d   : > { %2217 = vmatprep.mubr.msk.f32.mxu1 %vm371_vm1, %v732_v27 }
  0x30   : > { %2218 = vmatmul.mubr.msk.f32.gmra.mxu1 %vm371_vm1, %v733_v28 }
  0x31   : > { %2220 = vmatprep.mubr.msk.f32.mxu1 %vm371_vm1, %v734_v29 }
  0x34   : > { %2221 = vmatmul.mubr.msk.f32.gmra.mxu1 %vm371_vm1, %v735_v30 }
  0x35   : > { %2223 = vmatprep.mubr.msk.f32.mxu1 %vm371_vm1, %v736_v31 }
  0x38   : > { %2224 = vmatmul.mubr.msk.f32.gmra.mxu1 %vm371_vm1, %v737_v32 }
  0xd8   : > { %v2617_v39 = vpop.f32.mrf.mxu0 }
  0xd9   : > { %v449_v45 = vadd.f32 %v448_v40, %v2617_v39 }
  0xda   : > { %v2179_v42 = vpop.f32.mrf.mxu0 }
  0xdb   : > { %v2184_v43 = vpop.f32.mrf.mxu1  ;;  %v895_v50 = vrot.slane %v449_v45, %v894_v46  ;;  %v888_v61 = vcombine.high %v449_v45, %v449_v45 }
  0xdc   : > { %v2200_v44 = vpop.f32.mrf.mxu0 }
  0xdd   : > { %v562_v47 = vpop.f32.mrf.mxu1  ;;  %v903_v54 = vcombine.high %v895_v50, %v895_v50  ;;  %v697_v0 = vadd.f32 %v2200_v44, %v2184_v43  ;;  %v902_v7 = vrot.slane %v888_v61, %v894_v46  ;;  %v911_v8 = vrot.slane %v895_v50, %v894_v46 }
  0xde   : > { %v691_v48 = vpop.f32.mrf.mxu0 }
  0xdf   : > { %v925_v60 = vrot.slane %v903_v54, %v894_v46  ;;  %v692_v3 = vadd.f32 %v691_v48, %v562_v47  ;;  %v904_v20 = vcombine.high %v902_v7, %v902_v7  ;;  %v933_v21 = vcombine.high %v911_v8, %v911_v8 }
  0xe0   : > { %v2187_v49 = vpop.f32.mrf.mxu1  ;;  %v2203_v51 = vpop.f32.mrf.mxu0  ;;  %v940_v23 = vrot.slane %v911_v8, %v2612_v35  ;;  %v918_v28 = vrot.slane %v902_v7, %v894_v46 }
  0xe1   : > { %v944_v6 = vrot.slane %v925_v60, %v2612_v35  ;;  %v707_v10 = vadd.f32 %v2203_v51, %v2187_v49  ;;  %v935_v13 = vcombine.high %v925_v60, %v925_v60  ;;  %v948_v41 = vrot.slane %v933_v21, %v2612_v35 }
  0xe2   : > { %v572_v52 = vpop.f32.mrf.mxu1  ;;  %v701_v55 = vpop.f32.mrf.mxu0  ;;  %v932_v44 = vrot.slane %v904_v20, %v894_v46  ;;  %v956_v48 = vrot.slane %v918_v28, %v2612_v35  ;;  %v934_v49 = vcombine.high %v918_v28, %v918_v28 }
  0xe3   : > { %v702_v15 = vadd.f32 %v701_v55, %v572_v52  ;;  %v952_v27 = vrot.slane %v935_v13, %v2612_v35 }
  0xe4   : > { %v2190_v53 = vpop.f32.mrf.mxu1  ;;  %v2206_v59 = vpop.f32.mrf.mxu0  ;;  %v960_v46 = vrot.slane %v932_v44, %v2612_v35 }
  0xe5   : > { %v717_v24 = vadd.f32 %v2206_v59, %v2190_v53 }
  0xe6   : > { %v582_v56 = vpop.f32.mrf.mxu1  ;;  %v711_v4 = vpop.f32.mrf.mxu0 }
  0xe7   : > { %v712_v29 = vadd.f32 %v711_v4, %v582_v56 }
  0xe8   : > { %v2193_v58 = vpop.f32.mrf.mxu1  ;;  %v2209_v16 = vpop.f32.mrf.mxu0 }
  0xe9   : > { %v727_v42 = vadd.f32 %v2209_v16, %v2193_v58  ;;  %v936_v58 = vcombine.high %v932_v44, %v932_v44 }
  0xea   : > { %v592_v62 = vpop.f32.mrf.mxu1  ;;  %v721_v31 = vpop.f32.mrf.mxu0 }
  0xeb   : > { %v722_v45 = vadd.f32 %v721_v31, %v592_v62  ;;  %v964_v62 = vrot.slane %v934_v49, %v2612_v35 }
  0xec   : > { %v2216_v1 = vpop.f32.mrf.mxu1 }
  0xed   : > { %v868_v5 = vadd.f32 %v2216_v1, %v697_v0  ;;  %v968_v1 = vrot.slane %v936_v58, %v2612_v35 }
  0xee   : > { %v828_v9 = vpop.f32.mrf.mxu1 }
  0xef   : > { %v2627_v11 = vadd.f32 %v878_v63, %v868_v5  ;;  %v867_v12 = vadd.f32 %v828_v9, %v692_v3 }
  0xf0   : > { %v2219_v14 = vpop.f32.mrf.mxu1 }
  0xf1   : > { %v2629_v17 = vadd.f32 %v878_v63, %v867_v12  ;;  %v870_v18 = vadd.f32 %v2219_v14, %v707_v10  ;;  %v978_v19 = vmul.f32 %v944_v6, %v2627_v11 }
  0xf2   : > { %v838_v22 = vpop.f32.mrf.mxu1 }
  0xf3   : > { %v2633_v25 = vadd.f32 %v878_v63, %v870_v18  ;;  %v869_v26 = vadd.f32 %v838_v22, %v702_v15  ;;  %1405 = vrot.lane.b32.xlu0 %v978_v19, %s2418_s24  ;;  %v977_v38 = vmul.f32 %v940_v23, %v2629_v17  ;;  %v988_v4 = vsel %vm371_vm1, %v978_v19, 0.0 }
  0xf4   : > { %v2222_v30 = vpop.f32.mrf.mxu1 }
  0xf5   : > { %v2637_v32 = vadd.f32 %v878_v63, %v869_v26  ;;  %v872_v36 = vadd.f32 %v2222_v30, %v717_v24  ;;  %v980_v37 = vmul.f32 %v952_v27, %v2633_v25 }
  0xf6   : > { %v848_v40 = vpop.f32.mrf.mxu1 }
  0xf7   : > { %v871_v43 = vadd.f32 %v848_v40, %v712_v29  ;;  %1409 = vrot.lane.b32.xlu1 %v980_v37, %s2418_s24  ;;  %1403 = vrot.lane.b32.xlu0 %v977_v38, %s2418_s24  ;;  %v2645_v50 = vadd.f32 %v878_v63, %v872_v36  ;;  %v979_v53 = vmul.f32 %v948_v41, %v2637_v32  ;;  %v994_v6 = vsel %vm371_vm1, %v980_v37, 0.0 }
  0xf8   : > { %v2225_v47 = vpop.f32.mrf.mxu1  ;;  %v1042_v41 = vand.u32 127, %v445_v33 }
  0xf9   : > { %v2647_v51 = vadd.f32 %v878_v63, %v871_v43  ;;  %v874_v52 = vadd.f32 %v2225_v47, %v727_v42  ;;  %v982_v61 = vmul.f32 %v960_v46, %v2645_v50  ;;  %v991_v5 = vsel %vm371_vm1, %v979_v53, 0.0 }
  0xfa   : > { %v858_v54 = vpop.f32.mrf.mxu1 }
  0xfb   : > { %v873_v55 = vadd.f32 %v858_v54, %v722_v45  ;;  %1407 = vrot.lane.b32.xlu1 %v979_v53, %s2418_s24  ;;  %v981_v56 = vmul.f32 %v956_v48, %v2647_v51  ;;  %v2653_v59 = vadd.f32 %v878_v63, %v874_v52  ;;  %v1000_v8 = vsel %vm371_vm1, %v982_v61, 0.0 }
  0xfc   : > { %v2686_v52 = vsub.s32 %v1042_v41, %v2609_v34 }
  0xfd   : > { %v2655_v60 = vadd.f32 %v878_v63, %v873_v55  ;;  %1411 = vrot.lane.b32.xlu0 %v981_v56, %s2418_s24  ;;  %v984_v3 = vmul.f32 %v968_v1, %v2653_v59  ;;  %v985_v63 = vsel %vm371_vm1, %v977_v38, 0.0  ;;  %v997_v7 = vsel %vm371_vm1, %v981_v56, 0.0 }
  0xff   : > { %1413 = vrot.lane.b32.xlu1 %v982_v61, %s2418_s24  ;;  %v983_v0 = vmul.f32 %v964_v62, %v2655_v60  ;;  %v1006_v10 = vsel %vm371_vm1, %v984_v3, 0.0 }
 0x101   : > { %1415 = vrot.lane.b32.xlu0 %v983_v0, %s2418_s24  ;;  %v1003_v9 = vsel %vm371_vm1, %v983_v0, 0.0 }
 0x103   : > { %1417 = vrot.lane.b32.xlu1 %v984_v3, %s2418_s24  ;;  %s2098_s24 = sshll.u32 %s342_s22, 3 }
 0x104   : > { %s344_s26 = scalar_lea.vmem [#allocation2], %s2098_s24 }
 0x105   : > { %s1999_s10 = sshll.u32 %s344_s26, 4  ;;  %s2000_s10 = int_to_ptr.vmem [resolvable:$true] %s1999_s10 }
 0x106   : > { %s2353_s18 = scalar_lea.vmem %s2000_s10, 128 }
 0x107   : > { %p2354_p12 = scmp.ne.s32.totalorder %s2000_s10, %s2353_s18 }
 0x109   : > { %p2355_p13 = pnand %p2354_p12, %p2505_p5 }
 0x10b   : > { %p2356_p0 = pneg %p2355_p13 }
 0x120   : > { %986 = vadd.xlane.f32.xlu0 %v985_v63 }
 0x127   : > { %989 = vadd.xlane.f32.xlu1 %v988_v4 }
 0x12b   : > { %992 = vadd.xlane.f32.xlu1 %v991_v5 }
 0x12f   : > { %995 = vadd.xlane.f32.xlu1 %v994_v6 }
 0x133   : > { %998 = vadd.xlane.f32.xlu1 %v997_v7 }
 0x137   : > { %1001 = vadd.xlane.f32.xlu1 %v1000_v8 }
 0x13b   : > { %1004 = vadd.xlane.f32.xlu1 %v1003_v9 }
 0x13f   : > { %1007 = vadd.xlane.f32.xlu1 %v1006_v10 }
 0x165   : > { %v1406_v12 = vpop.permute.xlu0 %1405 }
 0x166   : > { %v1430_v13 = vsel %vm371_vm1, %v1406_v12, 0.0 }
 0x167   : > { %1431 = vadd.xlane.f32.xlu0 %v1430_v13 }
 0x169   : > { %v1410_v14 = vpop.permute.xlu1 %1409  ;;  %v1404_v15 = vpop.permute.xlu0 %1403 }
 0x16a   : > { %v1427_v16 = vsel %vm371_vm1, %v1404_v15, 0.0  ;;  %v1436_v19 = vsel %vm371_vm1, %v1410_v14, 0.0 }
 0x16b   : > { %1428 = vadd.xlane.f32.xlu0 %v1427_v16 }
 0x16d   : > { %v1408_v18 = vpop.permute.xlu1 %1407 }
 0x16e   : > { %v1433_v20 = vsel %vm371_vm1, %v1408_v18, 0.0 }
 0x16f   : > { %1437 = vadd.xlane.f32.xlu0 %v1436_v19  ;;  %v1412_v22 = vpop.permute.xlu0 %1411 }
 0x170   : > { %v1439_v24 = vsel %vm371_vm1, %v1412_v22, 0.0 }
 0x171   : > { %v1414_v21 = vpop.permute.xlu1 %1413 }
 0x172   : > { %v1442_v23 = vsel %vm371_vm1, %v1414_v21, 0.0 }
 0x173   : > { %1434 = vadd.xlane.f32.xlu0 %v1433_v20  ;;  %v1416_v26 = vpop.permute.xlu0 %1415  ;;  %v2419_v20 = vmov 0  }
 0x174   : > { %v1445_v27 = vsel %vm371_vm1, %v1416_v26, 0.0  ;;  %2283 = vset.pattern.permute.xlu0 %v2419_v20  ;;  %2282 = vset.pattern.permute.xlu1 %v2419_v20  ;;  %v2770_v20 = vsub.s32 5, %v2609_v34 }
 0x175   : > { %v1418_v28 = vpop.permute.xlu1 %1417 }
 0x176   : > { %v1448_v29 = vsel %vm371_vm1, %v1418_v28, 0.0 }
 0x177   : > { %1443 = vadd.xlane.f32.xlu0 %v1442_v23 }
 0x17b   : > { %1440 = vadd.xlane.f32.xlu0 %v1439_v24 }
 0x17f   : > { %1446 = vadd.xlane.f32.xlu0 %v1445_v27 }
 0x183   : > { %1449 = vadd.xlane.f32.xlu0 %v1448_v29 }
 0x1a9   : > { %v987_v37 = vpop.xlane.xlu0 %986 }
 0x1aa   : > { %v1017_v43 = vmul.f32 0.2, %v987_v37  ;;  %vm1009_vm5 = vcmp.gt.f32.partialorder %v987_v37, 0.0 }
 0x1ac   : > { %v2690_v33 = vsel %vm1009_vm5, %v987_v37, %v1017_v43 }
 0x1ad   : > { %v1046_v0 = vrot.slane %v2690_v33, %v2686_v52 }
 0x1b0   : > { %v990_v30 = vpop.xlane.xlu1 %989 }
 0x1b1   : > { %v1018_v40 = vmul.f32 0.2, %v990_v30  ;;  %vm1010_vm3 = vcmp.gt.f32.partialorder %v990_v30, 0.0 }
 0x1b3   : > { %v2683_v48 = vsel %vm1010_vm3, %v990_v30, %v1018_v40  ;;  %vm1087_vm3 = vcmask 1047559  }
 0x1b4   : > { %v993_v31 = vpop.xlane.xlu1 %992  ;;  %v1050_v55 = vrot.slane %v2683_v48, %v2686_v52 }
 0x1b5   : > { %v1019_v42 = vmul.f32 0.2, %v993_v31  ;;  %vm1011_vm4 = vcmp.gt.f32.partialorder %v993_v31, 0.0 }
 0x1b6   : > { %v1076_v4 = vsel %vm1075_vm9, %v1050_v55, %v1046_v0 }
 0x1b7   : > { %v2688_v53 = vsel %vm1011_vm4, %v993_v31, %v1019_v42 }
 0x1b8   : > { %v996_v36 = vpop.xlane.xlu1 %995  ;;  %v1054_v58 = vrot.slane %v2688_v53, %v2686_v52 }
 0x1b9   : > { %v1020_v44 = vmul.f32 0.2, %v996_v36  ;;  %vm1012_vm6 = vcmp.gt.f32.partialorder %v996_v36, 0.0 }
 0x1ba   : > { %v1078_v7 = vsel %vm1077_vm11, %v1054_v58, %v1076_v4 }
 0x1bb   : > { %v2692_v54 = vsel %vm1012_vm6, %v996_v36, %v1020_v44 }
 0x1bc   : > { %v999_v38 = vpop.xlane.xlu1 %998  ;;  %v1058_v1 = vrot.slane %v2692_v54, %v2686_v52 }
 0x1bd   : > { %v1021_v45 = vmul.f32 0.2, %v999_v38  ;;  %vm1013_vm7 = vcmp.gt.f32.partialorder %v999_v38, 0.0 }
 0x1be   : > { %v1080_v10 = vsel %vm1079_vm12, %v1058_v1, %v1078_v7 }
 0x1bf   : > { %v2696_v56 = vsel %vm1013_vm7, %v999_v38, %v1021_v45 }
 0x1c0   : > { %v1002_v47 = vpop.xlane.xlu1 %1001  ;;  %v1062_v3 = vrot.slane %v2696_v56, %v2686_v52 }
 0x1c1   : > { %v1022_v49 = vmul.f32 0.2, %v1002_v47  ;;  %vm1014_vm8 = vcmp.gt.f32.partialorder %v1002_v47, 0.0 }
 0x1c2   : > { %v1082_v13 = vsel %vm1081_vm13, %v1062_v3, %v1080_v10 }
 0x1c3   : > { %v2700_v61 = vsel %vm1014_vm8, %v1002_v47, %v1022_v49 }
 0x1c4   : > { %v1005_v46 = vpop.xlane.xlu1 %1004  ;;  %v1066_v5 = vrot.slane %v2700_v61, %v2686_v52 }
 0x1c5   : > { %vm1015_vm10 = vcmp.gt.f32.partialorder %v1005_v46, 0.0  ;;  %v1023_v62 = vmul.f32 0.2, %v1005_v46 }
 0x1c6   : > { %v1084_v15 = vsel %vm1083_vm14, %v1066_v5, %v1082_v13 }
 0x1c7   : > { %v2708_v63 = vsel %vm1015_vm10, %v1005_v46, %v1023_v62 }
 0x1c8   : > { %v1008_v6 = vpop.xlane.xlu1 %1007  ;;  %v1070_v8 = vrot.slane %v2708_v63, %v2686_v52 }
 0x1c9   : > { %vm1016_vm15 = vcmp.gt.f32.partialorder %v1008_v6, 0.0  ;;  %v1024_v9 = vmul.f32 0.2, %v1008_v6 }
 0x1ca   : > { %v1086_v16 = vsel %vm1085_vm0, %v1070_v8, %v1084_v15 }
 0x1cb   : > { %v2717_v12 = vsel %vm1016_vm15, %v1008_v6, %v1024_v9 }
 0x1cc   : > { %v1074_v14 = vrot.slane %v2717_v12, %v2686_v52 }
 0x1ce   : > { %v1088_v18 = vsel %vm1087_vm3, %v1074_v14, %v1086_v16 }
 0x1cf   : > { %v1090_v19 = vsel %vm471_vm2, %v1088_v18, -inf }
 0x1d0   : > { %1091 = vmax.xlane.f32.xlu1 %v1090_v19  ;;  %v2767_v19 = vsub.s32 2, %v2609_v34 }
 0x1f0   : > { %v1432_v21 = vpop.xlane.xlu0 %1431 }
 0x1f1   : > { %v1460_v28 = vmul.f32 0.2, %v1432_v21  ;;  %vm1452_vm6 = vcmp.gt.f32.partialorder %v1432_v21, 0.0 }
 0x1f3   : > { %v2730_v36 = vsel %vm1452_vm6, %v1432_v21, %v1460_v28  ;;  %v2773_v21 = vsub.s32 3, %v2609_v34  ;;  %v2782_v28 = vsub.s32 4, %v2609_v34 }
 0x1f4   : > { %v1429_v22 = vpop.xlane.xlu0 %1428  ;;  %v1490_v43 = vrot.slane %v2730_v36, %v2686_v52 }
 0x1f5   : > { %v1459_v26 = vmul.f32 0.2, %v1429_v22  ;;  %vm1451_vm4 = vcmp.gt.f32.partialorder %v1429_v22, 0.0 }
 0x1f7   : > { %v2726_v30 = vsel %vm1451_vm4, %v1429_v22, %v1459_v26  ;;  %v2776_v22 = vsub.s32 6, %v2609_v34 }
 0x1f8   : > { %v1438_v23 = vpop.xlane.xlu0 %1437  ;;  %v1486_v38 = vrot.slane %v2726_v30, %v2686_v52 }
 0x1f9   : > { %v1462_v37 = vmul.f32 0.2, %v1438_v23  ;;  %vm1454_vm7 = vcmp.gt.f32.partialorder %v1438_v23, 0.0 }
 0x1fa   : > { %v1515_v49 = vsel %vm1075_vm9, %v1490_v43, %v1486_v38 }
 0x1fb   : > { %v2738_v44 = vsel %vm1454_vm7, %v1438_v23, %v1462_v37 }
 0x1fc   : > { %v1435_v24 = vpop.xlane.xlu0 %1434  ;;  %v1498_v0 = vrot.slane %v2738_v44, %v2686_v52 }
 0x1fd   : > { %v1461_v27 = vmul.f32 0.2, %v1435_v24  ;;  %vm1453_vm5 = vcmp.gt.f32.partialorder %v1435_v24, 0.0 }
 0x1ff   : > { %v2728_v31 = vsel %vm1453_vm5, %v1435_v24, %v1461_v27  ;;  %vm1771_vm5 = vcmask 523648  }
 0x200   : > { %v1444_v29 = vpop.xlane.xlu0 %1443  ;;  %v1494_v41 = vrot.slane %v2728_v31, %v2686_v52 }
 0x201   : > { %v1464_v45 = vmul.f32 0.2, %v1444_v29  ;;  %vm1456_vm10 = vcmp.gt.f32.partialorder %v1444_v29, 0.0 }
 0x202   : > { %v1516_v46 = vsel %vm1077_vm11, %v1494_v41, %v1515_v49 }
 0x203   : > { %v2748_v1 = vsel %vm1456_vm10, %v1444_v29, %v1464_v45  ;;  %v1517_v5 = vsel %vm1079_vm12, %v1498_v0, %v1516_v46 }
 0x204   : > { %v1441_v40 = vpop.xlane.xlu0 %1440  ;;  %v1506_v9 = vrot.slane %v2748_v1, %v2686_v52 }
 0x205   : > { %vm1455_vm8 = vcmp.gt.f32.partialorder %v1441_v40, 0.0  ;;  %v1463_v42 = vmul.f32 0.2, %v1441_v40 }
 0x207   : > { %v2740_v47 = vsel %vm1455_vm8, %v1441_v40, %v1463_v42  ;;  %v2790_v42 = vsub.s32 7, %v2609_v34 }
 0x208   : > { %v1447_v55 = vpop.xlane.xlu0 %1446  ;;  %v1502_v58 = vrot.slane %v2740_v47, %v2686_v52 }
 0x209   : > { %vm1457_vm15 = vcmp.gt.f32.partialorder %v1447_v55, 0.0  ;;  %v1465_v62 = vmul.f32 0.2, %v1447_v55 }
 0x20a   : > { %v1518_v8 = vsel %vm1081_vm13, %v1502_v58, %v1517_v5 }
 0x20b   : > { %v2750_v3 = vsel %vm1457_vm15, %v1447_v55, %v1465_v62  ;;  %v1519_v14 = vsel %vm1083_vm14, %v1506_v9, %v1518_v8 }
 0x20c   : > { %v1450_v4 = vpop.xlane.xlu0 %1449  ;;  %v1510_v6 = vrot.slane %v2750_v3, %v2686_v52 }
 0x20d   : > { %vm1458_vm4 = vcmp.gt.f32.partialorder %v1450_v4, 0.0  ;;  %v1466_v7 = vmul.f32 0.2, %v1450_v4 }
 0x20e   : > { %v1520_v15 = vsel %vm1085_vm0, %v1510_v6, %v1519_v14 }
 0x20f   : > { %v2758_v10 = vsel %vm1458_vm4, %v1450_v4, %v1466_v7 }
 0x210   : > { %v1514_v13 = vrot.slane %v2758_v10, %v2686_v52 }
 0x212   : > { %v1521_v16 = vsel %vm1087_vm3, %v1514_v13, %v1520_v15 }
 0x213   : > { %v1523_v18 = vsel %vm471_vm2, %v1521_v16, -inf }
 0x214   : > { %1524 = vmax.xlane.f32.xlu0 %v1523_v18 }
 0x259   : > { %v1092_v23 = vpop.xlane.xlu1 %1091 }
 0x25a   : > { %v1097_v24 = vrot.slane %v1092_v23, %v2612_v35  ;;  %v1101_v26 = vrot.slane %v1092_v23, %v2623_v57  ;;  %v1105_v27 = vrot.slane %v1092_v23, %v2767_v19  ;;  %v1117_v29 = vrot.slane %v1092_v23, %v2770_v20 }
 0x25b   : > { %v1109_v37 = vrot.slane %v1092_v23, %v2773_v21  ;;  %v1121_v43 = vrot.slane %v1092_v23, %v2776_v22  ;;  %v1113_v46 = vrot.slane %v1092_v23, %v2782_v28 }
 0x25c   : > { %v1134_v38 = vsub.f32 %v2690_v33, %v1097_v24  ;;  %v1135_v40 = vsub.f32 %v2683_v48, %v1101_v26  ;;  %v1136_v41 = vsub.f32 %v2688_v53, %v1105_v27  ;;  %v1139_v45 = vsub.f32 %v2700_v61, %v1117_v29 }
 0x25d   : > { %v1137_v58 = vsub.f32 %v2692_v54, %v1109_v37  ;;  %v1125_v33 = vrot.slane %v1092_v23, %v2790_v42  ;;  %v1140_v48 = vsub.f32 %v2708_v63, %v1121_v43  ;;  %v1138_v34 = vsub.f32 %v2696_v56, %v1113_v46 }
 0x25e   : > { %v1142_v49 = vmul.f32 1.442695, %v1134_v38  ;;  %v1144_v55 = vmul.f32 1.442695, %v1135_v40  ;;  %v1146_v62 = vmul.f32 1.442695, %v1136_v41 }
 0x25f   : > { %v1152_v53 = vmul.f32 1.442695, %v1139_v45  ;;  %v1148_v0 = vmul.f32 1.442695, %v1137_v58  ;;  %v1141_v61 = vsub.f32 %v2717_v12, %v1125_v33  ;;  %v1154_v4 = vmul.f32 1.442695, %v1140_v48 }
 0x260   : > { %2284 = vpow2.f32 %v1142_v49  ;;  %v1150_v5 = vmul.f32 1.442695, %v1138_v34 }
 0x261   : > { %2286 = vpow2.f32 %v1144_v55  ;;  %v1156_v54 = vmul.f32 1.442695, %v1141_v61 }
 0x262   : > { %2288 = vpow2.f32 %v1146_v62 }
 0x263   : > { %2290 = vpow2.f32 %v1152_v53 }
 0x264   : > { %2292 = vpow2.f32 %v1148_v0 }
 0x265   : > { %2294 = vpow2.f32 %v1154_v4 }
 0x266   : > { %2296 = vpow2.f32 %v1150_v5 }
 0x267   : > { %2298 = vpow2.f32 %v1156_v54 }
 0x26d   : > { %v2800_v6 = vpop.eup %2284 }
 0x26e   : > { %v2802_v7 = vpop.eup %2286  ;;  %1167 = vperm.xlu1 %2282, %v2800_v6  }
 0x26f   : > { %1170 = vperm.xlu0 %2283, %v2802_v7   ;;  %v2806_v56 = vpop.eup %2288 }
 0x270   : > { %v2808_v63 = vpop.eup %2290 }
 0x271   : > { %v2812_v12 = vpop.eup %2292 }
 0x272   : > { %1173 = vperm.xlu1 %2282, %v2806_v56   ;;  %v2814_v8 = vpop.eup %2294 }
 0x273   : > { %1182 = vperm.xlu0 %2283, %v2808_v63   ;;  %v2818_v9 = vpop.eup %2296 }
 0x274   : > { %v2820_v13 = vpop.eup %2298 }
 0x276   : > { %1176 = vperm.xlu1 %2282, %v2812_v12  }
 0x277   : > { %1185 = vperm.xlu0 %2283, %v2814_v8  }
 0x27a   : > { %1179 = vperm.xlu1 %2282, %v2818_v9  }
 0x27b   : > { %1188 = vperm.xlu0 %2283, %v2820_v13  }
 0x29d   : > { %v1525_v14 = vpop.xlane.xlu0 %1524 }
 0x29e   : > { %v1530_v15 = vrot.slane %v1525_v14, %v2612_v35  ;;  %v1534_v16 = vrot.slane %v1525_v14, %v2623_v57  ;;  %v1538_v18 = vrot.slane %v1525_v14, %v2767_v19  ;;  %v1542_v27 = vrot.slane %v1525_v14, %v2773_v21 }
 0x29f   : > { %v1546_v38 = vrot.slane %v1525_v14, %v2782_v28  ;;  %v1550_v43 = vrot.slane %v1525_v14, %v2770_v20 }
 0x2a0   : > { %v1567_v23 = vsub.f32 %v2726_v30, %v1530_v15  ;;  %v1568_v24 = vsub.f32 %v2730_v36, %v1534_v16  ;;  %v1569_v29 = vsub.f32 %v2728_v31, %v1538_v18  ;;  %v1570_v40 = vsub.f32 %v2738_v44, %v1542_v27 }
 0x2a1   : > { %v1571_v45 = vsub.f32 %v2740_v47, %v1546_v38  ;;  %v1554_v36 = vrot.slane %v1525_v14, %v2776_v22  ;;  %v1572_v49 = vsub.f32 %v2748_v1, %v1550_v43  ;;  %v1558_v44 = vrot.slane %v1525_v14, %v2790_v42 }
 0x2a2   : > { %v1575_v26 = vmul.f32 1.442695, %v1567_v23  ;;  %v1577_v37 = vmul.f32 1.442695, %v1568_v24  ;;  %v1579_v41 = vmul.f32 1.442695, %v1569_v29 }
 0x2a3   : > { %v1581_v30 = vmul.f32 1.442695, %v1570_v40  ;;  %v1583_v31 = vmul.f32 1.442695, %v1571_v45  ;;  %v1573_v46 = vsub.f32 %v2750_v3, %v1554_v36  ;;  %v1585_v58 = vmul.f32 1.442695, %v1572_v49 }
 0x2a4   : > { %2300 = vpow2.f32 %v1575_v26  ;;  %v1574_v47 = vsub.f32 %v2758_v10, %v1558_v44 }
 0x2a5   : > { %2302 = vpow2.f32 %v1577_v37  ;;  %v1587_v1 = vmul.f32 1.442695, %v1573_v46 }
 0x2a6   : > { %2304 = vpow2.f32 %v1579_v41  ;;  %v1589_v48 = vmul.f32 1.442695, %v1574_v47 }
 0x2a7   : > { %2306 = vpow2.f32 %v1581_v30 }
 0x2a8   : > { %2308 = vpow2.f32 %v1583_v31 }
 0x2a9   : > { %2310 = vpow2.f32 %v1585_v58 }
 0x2aa   : > { %2312 = vpow2.f32 %v1587_v1 }
 0x2ab   : > { %2314 = vpow2.f32 %v1589_v48 }
 0x2b1   : > { %v2837_v55 = vpop.eup %2300 }
 0x2b2   : > { %1600 = vperm.xlu1 %2282, %v2837_v55   ;;  %v2842_v62 = vpop.eup %2302 }
 0x2b3   : > { %v2846_v33 = vpop.eup %2304 }
 0x2b4   : > { %v2849_v53 = vpop.eup %2306 }
 0x2b5   : > { %v2852_v3 = vpop.eup %2308 }
 0x2b6   : > { %1603 = vperm.xlu1 %2282, %v2842_v62   ;;  %v2855_v34 = vpop.eup %2310 }
 0x2b7   : > { %v2858_v10 = vpop.eup %2312 }
 0x2b8   : > { %v2861_v0 = vpop.eup %2314 }
 0x2ba   : > { %1606 = vperm.xlu1 %2282, %v2846_v33  }
 0x2be   : > { %1609 = vperm.xlu1 %2282, %v2849_v53  }
 0x2c2   : > { %1612 = vperm.xlu1 %2282, %v2852_v3  }
 0x2c6   : > { %1615 = vperm.xlu1 %2282, %v2855_v34  }
 0x2ca   : > { %1618 = vperm.xlu1 %2282, %v2858_v10  }
 0x2ce   : > { %1621 = vperm.xlu1 %2282, %v2861_v0  }
 0x2e9   : > { %v1168_v61 = vpop.permute.xlu1 %1167 }
 0x2ea   : > { %v1171_v4 = vpop.permute.xlu0 %1170  ;;  %v1193_v14 = vrot.slane %v1168_v61, %v2686_v52 }
 0x2eb   : > { %v1197_v15 = vrot.slane %v1171_v4, %v2686_v52 }
 0x2ed   : > { %v1174_v5 = vpop.permute.xlu1 %1173  ;;  %v1222_v26 = vsel %vm1075_vm9, %v1197_v15, %v1193_v14 }
 0x2ee   : > { %v1183_v54 = vpop.permute.xlu0 %1182  ;;  %v1201_v18 = vrot.slane %v1174_v5, %v2686_v52 }
 0x2ef   : > { %v1213_v40 = vrot.slane %v1183_v54, %v2686_v52 }
 0x2f0   : > { %v1223_v29 = vsel %vm1077_vm11, %v1201_v18, %v1222_v26 }
 0x2f1   : > { %v1177_v16 = vpop.permute.xlu1 %1176 }
 0x2f2   : > { %v1186_v23 = vpop.permute.xlu0 %1185  ;;  %v1205_v24 = vrot.slane %v1177_v16, %v2686_v52 }
 0x2f3   : > { %v1217_v43 = vrot.slane %v1186_v23, %v2686_v52 }
 0x2f4   : > { %v1224_v41 = vsel %vm1079_vm12, %v1205_v24, %v1223_v29 }
 0x2f5   : > { %v1180_v27 = vpop.permute.xlu1 %1179 }
 0x2f6   : > { %v1209_v37 = vrot.slane %v1180_v27, %v2686_v52  ;;  %v1189_v38 = vpop.permute.xlu0 %1188 }
 0x2f7   : > { %v1221_v30 = vrot.slane %v1189_v38, %v2686_v52 }
 0x2f8   : > { %v1225_v45 = vsel %vm1081_vm13, %v1209_v37, %v1224_v41 }
 0x2f9   : > { %v1226_v36 = vsel %vm1083_vm14, %v1213_v40, %v1225_v45 }
 0x2fa   : > { %v1227_v49 = vsel %vm1085_vm0, %v1217_v43, %v1226_v36 }
 0x2fb   : > { %v1228_v31 = vsel %vm1087_vm3, %v1221_v30, %v1227_v49 }
 0x2fc   : > { %v1230_v44 = vsel %vm471_vm2, %v1228_v31, 0.0 }
 0x2fd   : > { %1231 = vadd.xlane.f32.xlu0 %v1230_v44 }
 0x32d   : > { %v1601_v46 = vpop.permute.xlu1 %1600 }
 0x32e   : > { %v1626_v54 = vrot.slane %v1601_v46, %v2686_v52 }
 0x331   : > { %v1604_v58 = vpop.permute.xlu1 %1603 }
 0x332   : > { %v1630_v4 = vrot.slane %v1604_v58, %v2686_v52 }
 0x334   : > { %v1655_v18 = vsel %vm1075_vm9, %v1630_v4, %v1626_v54 }
 0x335   : > { %v1607_v47 = vpop.permute.xlu1 %1606 }
 0x336   : > { %v1634_v5 = vrot.slane %v1607_v47, %v2686_v52 }
 0x338   : > { %v1656_v24 = vsel %vm1077_vm11, %v1634_v5, %v1655_v18 }
 0x339   : > { %v1610_v1 = vpop.permute.xlu1 %1609 }
 0x33a   : > { %v1638_v14 = vrot.slane %v1610_v1, %v2686_v52 }
 0x33c   : > { %v1657_v27 = vsel %vm1079_vm12, %v1638_v14, %v1656_v24 }
 0x33d   : > { %v1613_v48 = vpop.permute.xlu1 %1612 }
 0x33e   : > { %v1642_v15 = vrot.slane %v1613_v48, %v2686_v52 }
 0x340   : > { %v1658_v29 = vsel %vm1081_vm13, %v1642_v15, %v1657_v27 }
 0x341   : > { %v1616_v61 = vpop.permute.xlu1 %1615 }
 0x342   : > { %v1646_v23 = vrot.slane %v1616_v61, %v2686_v52 }
 0x344   : > { %v1659_v38 = vsel %vm1083_vm14, %v1646_v23, %v1658_v29 }
 0x345   : > { %v1619_v16 = vpop.permute.xlu1 %1618 }
 0x346   : > { %v1650_v26 = vrot.slane %v1619_v16, %v2686_v52 }
 0x348   : > { %v1660_v41 = vsel %vm1085_vm0, %v1650_v26, %v1659_v38 }
 0x349   : > { %v1622_v37 = vpop.permute.xlu1 %1621 }
 0x34a   : > { %v1654_v40 = vrot.slane %v1622_v37, %v2686_v52 }
 0x34c   : > { %v1661_v43 = vsel %vm1087_vm3, %v1654_v40, %v1660_v41 }
 0x34d   : > { %v1663_v45 = vsel %vm471_vm2, %v1661_v43, 0.0  ;;  %vm1338_vm2 = vcmask 392448  }
 0x34e   : > { %1664 = vadd.xlane.f32.xlu1 %v1663_v45 }
 0x386   : > { %v1232_v30 = vpop.xlane.xlu0 %1231 }
 0x387   : > { %v1241_v36 = vrot.slane %v1232_v30, %v2623_v57  ;;  %v1237_v49 = vrot.slane %v1232_v30, %v2612_v35  ;;  %v1245_v31 = vrot.slane %v1232_v30, %v2767_v19  ;;  %v1249_v44 = vrot.slane %v1232_v30, %v2773_v21 }
 0x388   : > { %v1253_v52 = vrot.slane %v1232_v30, %v2782_v28  ;;  %v1257_v46 = vrot.slane %v1232_v30, %v2770_v20  ;;  %v1261_v24 = vrot.slane %v1232_v30, %v2776_v22 }
 0x389   : > { %2316 = vrcp.f32 %v1241_v36 }
 0x38a   : > { %2318 = vrcp.f32 %v1237_v49 }
 0x38b   : > { %2320 = vrcp.f32 %v1245_v31 }
 0x38c   : > { %2322 = vrcp.f32 %v1249_v44 }
 0x38d   : > { %2324 = vrcp.f32 %v1253_v52 }
 0x38e   : > { %2326 = vrcp.f32 %v1257_v46 }
 0x396   : > { %v2317_v58 = vpop.eup %2316 }
 0x397   : > { %v2319_v47 = vpop.eup %2318  ;;  %v1277_v1 = vmul.f32 %v2317_v58, %v2802_v7 }
 0x398   : > { %v1275_v48 = vmul.f32 %v2319_v47, %v2800_v6  ;;  %v2321_v61 = vpop.eup %2320 }
 0x399   : > { %1297 = vperm.xlu1 %2282, %v1277_v1   ;;  %v1279_v4 = vmul.f32 %v2321_v61, %v2806_v56  ;;  %v2323_v5 = vpop.eup %2322 }
 0x39a   : > { %1292 = vperm.xlu0 %2283, %v1275_v48   ;;  %v1281_v54 = vmul.f32 %v2323_v5, %v2812_v12  ;;  %v2325_v14 = vpop.eup %2324 }
 0x39b   : > { %v1283_v15 = vmul.f32 %v2325_v14, %v2818_v9  ;;  %v2327_v16 = vpop.eup %2326  ;;  %v1265_v9 = vrot.slane %v1232_v30, %v2790_v42 }
 0x39c   : > { %v1285_v7 = vmul.f32 %v2327_v16, %v2808_v63 }
 0x39e   : > { %1302 = vperm.xlu0 %2283, %v1279_v4  }
 0x3a2   : > { %1307 = vperm.xlu0 %2283, %v1281_v54  }
 0x3a6   : > { %1312 = vperm.xlu0 %2283, %v1283_v15  }
 0x3aa   : > { %1317 = vperm.xlu0 %2283, %v1285_v7  }
 0x3d7   : > { %v1665_v6 = vpop.xlane.xlu1 %1664 }
 0x3d8   : > { %v1674_v18 = vrot.slane %v1665_v6, %v2623_v57  ;;  %v1670_v23 = vrot.slane %v1665_v6, %v2612_v35  ;;  %v1678_v56 = vrot.slane %v1665_v6, %v2767_v19  ;;  %v1682_v12 = vrot.slane %v1665_v6, %v2773_v21 }
 0x3d9   : > { %v1686_v63 = vrot.slane %v1665_v6, %v2782_v28  ;;  %v1690_v57 = vrot.slane %v1665_v6, %v2770_v20  ;;  %v1694_v29 = vrot.slane %v1665_v6, %v2776_v22  ;;  %v1698_v28 = vrot.slane %v1665_v6, %v2790_v42 }
 0x3da   : > { %2328 = vrcp.f32 %v1674_v18 }
 0x3db   : > { %2330 = vrcp.f32 %v1670_v23 }
 0x3dc   : > { %2332 = vrcp.f32 %v1678_v56 }
 0x3dd   : > { %2334 = vrcp.f32 %v1261_v24 }
 0x3de   : > { %2336 = vrcp.f32 %v1682_v12 }
 0x3df   : > { %2338 = vrcp.f32 %v1265_v9 }
 0x3e0   : > { %2340 = vrcp.f32 %v1686_v63 }
 0x3e1   : > { %2342 = vrcp.f32 %v1690_v57 }
 0x3e2   : > { %2344 = vrcp.f32 %v1694_v29 }
 0x3e3   : > { %2346 = vrcp.f32 %v1698_v28 }
 0x3e7   : > { %v2329_v35 = vpop.eup %2328 }
 0x3e8   : > { %v2331_v26 = vpop.eup %2330  ;;  %v1710_v27 = vmul.f32 %v2329_v35, %v2842_v62 }
 0x3e9   : > { %v2333_v37 = vpop.eup %2332  ;;  %v1708_v38 = vmul.f32 %v2331_v26, %v2837_v55 }
 0x3ea   : > { %v2335_v40 = vpop.eup %2334  ;;  %1730 = vperm.xlu1 %2282, %v1710_v27   ;;  %v1712_v41 = vmul.f32 %v2333_v37, %v2846_v33 }
 0x3eb   : > { %1725 = vperm.xlu0 %2283, %v1708_v38   ;;  %v2337_v43 = vpop.eup %2336  ;;  %v1287_v20 = vmul.f32 %v2335_v40, %v2814_v8 }
 0x3ec   : > { %v2339_v45 = vpop.eup %2338  ;;  %v1714_v62 = vmul.f32 %v2337_v43, %v2849_v53 }
 0x3ed   : > { %v2341_v22 = vpop.eup %2340  ;;  %v1289_v55 = vmul.f32 %v2339_v45, %v2820_v13 }
 0x3ee   : > { %1735 = vperm.xlu1 %2282, %v1712_v41   ;;  %v1716_v30 = vmul.f32 %v2341_v22, %v2852_v3  ;;  %v2343_v33 = vpop.eup %2342 }
 0x3ef   : > { %1322 = vperm.xlu0 %2283, %v1287_v20   ;;  %v1718_v42 = vmul.f32 %v2343_v33, %v2855_v34  ;;  %v2345_v36 = vpop.eup %2344 }
 0x3f0   : > { %v1720_v8 = vmul.f32 %v2345_v36, %v2858_v10  ;;  %v2347_v49 = vpop.eup %2346 }
 0x3f1   : > { %v1722_v53 = vmul.f32 %v2347_v49, %v2861_v0 }
 0x3f2   : > { %1740 = vperm.xlu1 %2282, %v1714_v62  }
 0x3f3   : > { %1327 = vperm.xlu0 %2283, %v1289_v55  }
 0x3f6   : > { %1745 = vperm.xlu1 %2282, %v1716_v30  }
 0x3fa   : > { %1750 = vperm.xlu1 %2282, %v1718_v42  }
 0x3fe   : > { %1755 = vperm.xlu1 %2282, %v1720_v8  }
 0x402   : > { %1760 = vperm.xlu1 %2282, %v1722_v53  }
 0x414   : > { %v1298_v52 = vpop.permute.xlu1 %1297 }
 0x415   : > { %v1293_v31 = vpop.permute.xlu0 %1292  ;;  %v1331_v3 = vmul.f32 %v1298_v52, %v2627_v11 }
 0x416   : > { %v1330_v58 = vmul.f32 %v1293_v31, %v2629_v17 }
 0x417   : > { %v1346_v47 = vsel %vm1338_vm2, %v1331_v3, 0.0 }
 0x418   : > { %v1339_v1 = vsel %vm1338_vm2, %v1330_v58, 0.0  ;;  %v1347_v61 = vrot.slane %v1346_v47, 4 }
 0x419   : > { %v1303_v44 = vpop.permute.xlu0 %1302  ;;  %v1340_v54 = vrot.slane %v1339_v1, 4 }
 0x41a   : > { %v1332_v34 = vmul.f32 %v1303_v44, %v2637_v32  ;;  %v1348_v16 = vadd.f32 %v1347_v61, %v1346_v47 }
 0x41b   : > { %v1341_v18 = vadd.f32 %v1340_v54, %v1339_v1 }
 0x41c   : > { %v1353_v48 = vsel %vm1338_vm2, %v1332_v34, 0.0  ;;  %v1349_v9 = vrot.slane %v1348_v16, 2 }
 0x41d   : > { %v1308_v13 = vpop.permute.xlu0 %1307  ;;  %v1354_v14 = vrot.slane %v1353_v48, 4  ;;  %v1342_v63 = vrot.slane %v1341_v18, 2 }
 0x41e   : > { %v1333_v0 = vmul.f32 %v1308_v13, %v2633_v25  ;;  %v1350_v40 = vadd.f32 %v1349_v9, %v1348_v16 }
 0x41f   : > { %v1355_v56 = vadd.f32 %v1354_v14, %v1353_v48  ;;  %v1343_v28 = vadd.f32 %v1342_v63, %v1341_v18 }
 0x420   : > { %v1360_v15 = vsel %vm1338_vm2, %v1333_v0, 0.0  ;;  %v1351_v36 = vrot.slane %v1350_v40, 1 }
 0x421   : > { %v1313_v46 = vpop.permute.xlu0 %1312  ;;  %v1361_v23 = vrot.slane %v1360_v15, 4  ;;  %v1356_v26 = vrot.slane %v1355_v56, 2  ;;  %v1344_v8 = vrot.slane %v1343_v28, 1 }
 0x422   : > { %v1334_v4 = vmul.f32 %v1313_v46, %v2647_v51 }
 0x423   : > { %v1362_v57 = vadd.f32 %v1361_v23, %v1360_v15  ;;  %v1357_v45 = vadd.f32 %v1356_v26, %v1355_v56  ;;  %v1345_v61 = vadd.f32 %v1344_v8, %v1343_v28 }
 0x424   : > { %v1367_v7 = vsel %vm1338_vm2, %v1334_v4, 0.0 }
 0x425   : > { %v1318_v10 = vpop.permute.xlu0 %1317  ;;  %v1368_v24 = vrot.slane %v1367_v7, 4  ;;  %v1363_v43 = vrot.slane %v1362_v57, 2  ;;  %v1358_v44 = vrot.slane %v1357_v45, 1 }
 0x426   : > { %v1335_v5 = vmul.f32 %v1318_v10, %v2645_v50  ;;  %v1352_v10 = vadd.f32 %v1351_v36, %v1350_v40 }
 0x427   : > { %v1369_v29 = vadd.f32 %v1368_v24, %v1367_v7  ;;  %v1364_v49 = vadd.f32 %v1363_v43, %v1362_v57  ;;  %v1359_v18 = vadd.f32 %v1358_v44, %v1357_v45 }
 0x428   : > { %v1374_v6 = vsel %vm1338_vm2, %v1335_v5, 0.0 }
 0x429   : > { %v1375_v12 = vrot.slane %v1374_v6, 4  ;;  %v1370_v55 = vrot.slane %v1369_v29, 2  ;;  %v1365_v4 = vrot.slane %v1364_v49, 1 }
 0x42b   : > { %v1376_v37 = vadd.f32 %v1375_v12, %v1374_v6  ;;  %v1371_v3 = vadd.f32 %v1370_v55, %v1369_v29  ;;  %v1366_v26 = vadd.f32 %v1365_v4, %v1364_v49  ;;  %v1865_v55 = vld [vmem:[%s3044_s6] sm:$0xff] }
 0x42d   : > { %v1377_v30 = vrot.slane %v1376_v37, 2  ;;  %v1372_v23 = vrot.slane %v1371_v3, 1 }
 0x42f   : > { %v1378_v58 = vadd.f32 %v1377_v30, %v1376_v37  ;;  %v1373_v45 = vadd.f32 %v1372_v23, %v1371_v3 }
 0x431   : > { %v1379_v56 = vrot.slane %v1378_v58, 1 }
 0x433   : > { %v1380_v30 = vadd.f32 %v1379_v56, %v1378_v58 }
 0x465   : > { %v1731_v35 = vpop.permute.xlu1 %1730 }
 0x466   : > { %v1726_v27 = vpop.permute.xlu0 %1725  ;;  %v1764_v38 = vmul.f32 %v1731_v35, %v2627_v11  ;;  %v1836_v35 = vsel %vm1075_vm9, %v1352_v10, %v1345_v61 }
 0x467   : > { %v1763_v41 = vmul.f32 %v1726_v27, %v2629_v17 }
 0x468   : > { %v1779_v33 = vsel %vm1771_vm5, %v1764_v38, 0.0  ;;  %v1866_v38 = vld [vmem:[%s3044_s6 + $0x8] sm:$0xff] }
 0x469   : > { %v1736_v20 = vpop.permute.xlu1 %1735  ;;  %v1772_v11 = vsel %vm1771_vm5, %v1763_v41, 0.0  ;;  %v1780_v13 = vrot.slane %v1779_v33, 4 }
 0x46a   : > { %v1765_v62 = vmul.f32 %v1736_v20, %v2637_v32  ;;  %v1323_v22 = vpop.permute.xlu0 %1322  ;;  %v1773_v34 = vrot.slane %v1772_v11, 4  ;;  %v1837_v20 = vsel %vm1077_vm11, %v1359_v18, %v1836_v35 }
 0x46b   : > { %v1336_v42 = vmul.f32 %v1323_v22, %v2655_v60  ;;  %v1781_v15 = vadd.f32 %v1780_v13, %v1779_v33 }
 0x46c   : > { %v1786_v17 = vsel %vm1771_vm5, %v1765_v62, 0.0  ;;  %v1774_v24 = vadd.f32 %v1773_v34, %v1772_v11 }
 0x46d   : > { %v1381_v53 = vsel %vm1338_vm2, %v1336_v42, 0.0  ;;  %v1741_v31 = vpop.permute.xlu1 %1740  ;;  %v1787_v1 = vrot.slane %v1786_v17, 4  ;;  %v1782_v40 = vrot.slane %v1781_v15, 2 }
 0x46e   : > { %v1382_v32 = vrot.slane %v1381_v53, 4  ;;  %v1766_v52 = vmul.f32 %v1741_v31, %v2633_v25  ;;  %v1328_v46 = vpop.permute.xlu0 %1327  ;;  %v1868_v25 = vld [vmem:[%s3044_s6 + $0x18] sm:$0xff]  ;;  %v1775_v62 = vrot.slane %v1774_v24, 2 }
 0x46f   : > { %v1337_v47 = vmul.f32 %v1328_v46, %v2653_v59  ;;  %2227 = vmatpush3.msra.mxu0 %v1868_v25  ;;  %v1788_v12 = vadd.f32 %v1787_v1, %v1786_v17  ;;  %v1838_v17 = vsel %vm1079_vm12, %v1366_v26, %v1837_v20 }
 0x470   : > { %v1383_v0 = vadd.f32 %v1382_v32, %v1381_v53  ;;  %v1793_v48 = vsel %vm1771_vm5, %v1766_v52, 0.0  ;;  %2228 = vmatprep.subr.mxu0 %v2415_v2  ;;  %v1783_v53 = vadd.f32 %v1782_v40, %v1781_v15  ;;  %v1776_v32 = vadd.f32 %v1775_v62, %v1774_v24 }
 0x471   : > { %v1794_v5 = vrot.slane %v1793_v48, 4  ;;  %v1388_v54 = vsel %vm1338_vm2, %v1337_v47, 0.0  ;;  %v1746_v14 = vpop.permute.xlu1 %1745  ;;  %v1789_v33 = vrot.slane %v1788_v12, 2  ;;  %v1839_v46 = vsel %vm1081_vm13, %v1373_v45, %v1838_v17 }
 0x472   : > { %v1384_v16 = vrot.slane %v1383_v0, 2  ;;  %v1389_v7 = vrot.slane %v1388_v54, 4  ;;  %v1767_v6 = vmul.f32 %v1746_v14, %v2647_v51  ;;  %v1867_v51 = vld [vmem:[%s3044_s6 + $0x10] sm:$0xff]  ;;  %v1840_v47 = vsel %vm1083_vm14, %v1380_v30, %v1839_v46 }
 0x473   : > { %v1795_v27 = vadd.f32 %v1794_v5, %v1793_v48  ;;  %2229 = vmatpush3.msra.mxu0 %v1867_v51  ;;  %v1790_v3 = vadd.f32 %v1789_v33, %v1788_v12  ;;  %v1784_v61 = vrot.slane %v1783_v53, 1  ;;  %v2352_v33 = vld [vmem:[%s3045_s7] sm:$0xff] }
 0x474   : > { %v1385_v9 = vadd.f32 %v1384_v16, %v1383_v0  ;;  %v1390_v63 = vadd.f32 %v1389_v7, %v1388_v54  ;;  %v1800_v57 = vsel %vm1771_vm5, %v1767_v6, 0.0  ;;  %2230 = vmatprep.subr.mxu0 %v2415_v2  ;;  %v1777_v54 = vrot.slane %v1776_v32, 1 }
 0x475   : > { %v1801_v29 = vrot.slane %v1800_v57, 4  ;;  %v1751_v37 = vpop.permute.xlu1 %1750  ;;  %2231 = vmatpush3.msra.mxu0 %v1866_v38  ;;  %v1791_v15 = vrot.slane %v1790_v3, 1  ;;  %v1785_v23 = vadd.f32 %v1784_v61, %v1783_v53  ;;  %v1977_v46 = vrot.slane %v2352_v33, %v2773_v21 }
 0x476   : > { %v1386_v41 = vrot.slane %v1385_v9, 1  ;;  %v1391_v28 = vrot.slane %v1390_v63, 2  ;;  %v1768_v43 = vmul.f32 %v1751_v37, %v2645_v50  ;;  %v1796_v50 = vrot.slane %v1795_v27, 2  ;;  %2232 = vmatprep.subr.mxu0 %v2415_v2 }
 0x477   : > { %v1802_v22 = vadd.f32 %v1801_v29, %v1800_v57  ;;  %2233 = vmatpush3.msra.mxu0 %v1865_v55  ;;  %v1778_v24 = vadd.f32 %v1777_v54, %v1776_v32 }
 0x478   : > { %v1392_v42 = vadd.f32 %v1391_v28, %v1390_v63  ;;  %v1807_v36 = vsel %vm1771_vm5, %v1768_v43, 0.0  ;;  %v1387_v11 = vadd.f32 %v1386_v41, %v1385_v9  ;;  %v1797_v10 = vadd.f32 %v1796_v50, %v1795_v27 }
 0x479   : > { %v1808_v8 = vrot.slane %v1807_v36, 4  ;;  %v1756_v49 = vpop.permute.xlu1 %1755  ;;  %v1803_v44 = vrot.slane %v1802_v22, 2  ;;  %v1792_v63 = vadd.f32 %v1791_v15, %v1790_v3  ;;  %v1854_v29 = vsel %vm1075_vm9, %v1785_v23, %v1778_v24 }
 0x47a   : > { %v1393_v31 = vrot.slane %v1392_v42, 1  ;;  %v1769_v13 = vmul.f32 %v1756_v49, %v2655_v60  ;;  %v1841_v48 = vsel %vm1085_vm0, %v1387_v11, %v1840_v47  ;;  %v1798_v7 = vrot.slane %v1797_v10, 1 }
 0x47b   : > { %v1809_v52 = vadd.f32 %v1808_v8, %v1807_v36  ;;  %v1804_v4 = vadd.f32 %v1803_v44, %v1802_v22  ;;  %v1855_v38 = vsel %vm1077_vm11, %v1792_v63, %v1854_v29  ;;  %vm1873_vm9 = vcmask 261120  }
 0x47c   : > { %v1814_v58 = vsel %vm1771_vm5, %v1769_v13, 0.0  ;;  %v1394_v34 = vadd.f32 %v1393_v31, %v1392_v42  ;;  %v1799_v57 = vadd.f32 %v1798_v7, %v1797_v10  ;;  %v1950_v42 = vrot.slane %v2352_v33, %v2767_v19 }
 0x47d   : > { %v1810_v1 = vrot.slane %v1809_v52, 2  ;;  %v1815_v0 = vrot.slane %v1814_v58, 4  ;;  %v1761_v2 = vpop.permute.xlu1 %1760  ;;  %v1805_v56 = vrot.slane %v1804_v4, 1 }
 0x47e   : > { %v1770_v60 = vmul.f32 %v1761_v2, %v2653_v59  ;;  %v1842_v5 = vsel %vm1087_vm3, %v1394_v34, %v1841_v48  ;;  %v1856_v28 = vsel %vm1079_vm12, %v1799_v57, %v1855_v38 }
 0x47f   : > { %v1811_v14 = vadd.f32 %v1810_v1, %v1809_v52  ;;  %v1816_v25 = vadd.f32 %v1815_v0, %v1814_v58  ;;  %1843 = vrot.lane.b32.xlu0 %v1842_v5, %s2420_s19  ;;  %v1806_v27 = vadd.f32 %v1805_v56, %v1804_v4 }
 0x480   : > { %v1821_v16 = vsel %vm1771_vm5, %v1770_v60, 0.0 }
 0x481   : > { %v1817_v6 = vrot.slane %v1816_v25, 2  ;;  %v1822_v18 = vrot.slane %v1821_v16, 4  ;;  %v1812_v12 = vrot.slane %v1811_v14, 1  ;;  %v1857_v43 = vsel %vm1081_vm13, %v1806_v27, %v1856_v28 }
 0x483   : > { %v1818_v9 = vadd.f32 %v1817_v6, %v1816_v25  ;;  %v1823_v59 = vadd.f32 %v1822_v18, %v1821_v16  ;;  %1870 = vrot.lane.b32.xlu0 %v2617_v39, %s2420_s19  ;;  %v1813_v37 = vadd.f32 %v1812_v12, %v1811_v14 }
 0x485   : > { %v1819_v35 = vrot.slane %v1818_v9, 1  ;;  %v1824_v26 = vrot.slane %v1823_v59, 2  ;;  %v1858_v39 = vsel %vm1083_vm14, %v1813_v37, %v1857_v43 }
 0x487   : > { %v1825_v51 = vadd.f32 %v1824_v26, %v1823_v59  ;;  %v1820_v40 = vadd.f32 %v1819_v35, %v1818_v9 }
 0x489   : > { %v1826_v41 = vrot.slane %v1825_v51, 1  ;;  %v1859_v45 = vsel %vm1085_vm0, %v1820_v40, %v1858_v39 }
 0x48b   : > { %v1827_v20 = vadd.f32 %v1826_v41, %v1825_v51 }
 0x48d   : > { %v1860_v62 = vsel %vm1087_vm3, %v1827_v20, %v1859_v45 }
 0x48e   : > { %1861 = vrot.lane.b32.xlu1 %v1860_v62, %s2420_s19 }
 0x4f1   : > { %v1844_v22 = vpop.permute.xlu0 %1843 }
 0x4f5   : > { %v1871_v36 = vpop.permute.xlu0 %1870 }
 0x500   : > { %v1862_v55 = vpop.permute.xlu1 %1861 }
 0x501   : > { %v1864_v30 = vsel %vm371_vm1, %v1844_v22, %v1862_v55 }
 0x502   : > { %2235 = vmatmul.mubr.msk.f32.vlgmr.msra.gmra.mxu0 %vm1873_vm9, %v1864_v30 }
 0x5c2   : > { %v1943_v11 = vpop.f32.mrf.mxu0 }
 0x5c3   : > { %v1944_v50 = vadd.f32 %v1943_v11, %v1871_v36 }
 0x5c4   : > { %v2236_v8 = vpop.f32.mrf.mxu0 }
 0x5c5   : > { %v1951_v49 = vadd.f32 %v1950_v42, %v1944_v50 }
 0x5c7   : > { %v1952_v17 = vmax.f32 %v1951_v49, 0.0 }
 0x5c9   : > { %v1953_v53 = vsel %vm1873_vm9, %v1952_v17, 0.0 }
 0x5ca   : > { %1954 = vadd.xlane.f32.xlu1 %v1953_v53 }
 0x653   : > { %v1955_v31 = vpop.xlane.xlu1 %1954 }
 0x654   : > { %v1957_v44 = vmul.f32 0.03125, %v1955_v31 }
 0x656   : > { %v1958_v13 = vsub.f32 %v1952_v17, %v1957_v44 }
 0x658   : > { %v1959_v32 = vmul.f32 %v1958_v13, %v1958_v13 }
 0x65a   : > { %v1960_v52 = vsel %vm1873_vm9, %v1959_v32, 0.0 }
 0x65b   : > { %1961 = vadd.xlane.f32.xlu0 %v1960_v52 }
 0x671   : > { %1980 = vrot.lane.b32.xlu0 %v1977_v46, %s2420_s19  ;;  %s2421_s19 = smov [#allocation2]  }
 0x672   : > { %s2357_s20 = sshll.u32 %s2421_s19, 4  ;;  %s2358_s20 = int_to_ptr.vmem [resolvable:$false] %s2357_s20 }
 0x673   : > { %s2359_s9 = scalar_lea.vmem %s2358_s20, 256  ;;  %p2360_p1 = scmp.lt.s32.totalorder %s2000_s10, %s2358_s20 }
 0x674   : > { %p2361_p2 = scmp.lt.s32.totalorder %s2359_s9, %s2353_s18 }
 0x676   : > { %p2362_p3 = por %p2361_p2, %p2360_p1 }
 0x678   : > { %p2363_p4 = pnand %p2362_p3, %p2356_p0 }
 0x6e4   : > { %v1962_v19 = vpop.xlane.xlu0 %1961 }
 0x6e5   : > { %v1963_v3 = vmul.f32 0.03125, %v1962_v19 }
 0x6e7   : > { %v1964_v58 = vadd.f32 1e-05, %v1963_v3 }
 0x6e8   : > { %v1981_v48 = vpop.permute.xlu0 %1980 }
 0x6e9   : > { %2348 = vrsqrt.f32 %v1964_v58  ;;  %vm1967_vm1 = vcmp.eq.f32.partialorder %v1964_v58, inf  ;;  %v1970_v10 = vand.u32 2147483648, %v1964_v58  ;;  %vm1969_vm11 = vcmp.eq.f32.partialorder %v1964_v58, 0.0 }
 0x6f6   : > { %v2349_v34 = vpop.eup %2348 }
 0x6f7   : > { %v1966_v47 = vmul.f32 %v2349_v34, %v1964_v58 }
 0x6f9   : > { %v1968_v1 = vsel %vm1967_vm1, %v1964_v58, %v1966_v47 }
 0x6fa   : > { %v1971_v0 = vsel %vm1969_vm11, %v1970_v10, %v1968_v1 }
 0x6fb   : > { %2350 = vrcp.f32 %v1971_v0 }
 0x708   : > { %v2351_v2 = vpop.eup %2350 }
 0x709   : > { %v1973_v21 = vmul.f32 %v2351_v2, %v1958_v13 }
 0x70b   : > { %v1978_v61 = vmul.f32 %v1977_v46, %v1973_v21 }
 0x70d   : > { %v1983_v4 = vadd.f32 %v1981_v48, %v1978_v61 }
 0x70f   : > { %1984 = vst.msk [vmem:[%s344_s26] sm:$0xff] %vm1873_vm9, %v1983_v4 }
 0x710   : > { %2366 = shalt.err (!%p2363_p4)
}
 0x711   : > { %s2367_s21 = scalar_lea.hbm %s1997_s23, 128  ;;  %s2371_s25 = scalar_lea.hbm %s3046_s8, 256 }
 0x712   : > { %p2368_p7 = scmp.ne.s32.totalorder %s1997_s23, %s2367_s21  ;;  %p2372_p10 = scmp.lt.s32.totalorder %s1997_s23, %s3046_s8 }
 0x713   : > { %p2373_p11 = scmp.lt.s32.totalorder %s2371_s25, %s2367_s21 }
 0x714   : > { %p2369_p8 = pnand %p2368_p7, %p2505_p5 }
 0x715   : > { %p2374_p12 = por %p2373_p11, %p2372_p10 }
 0x716   : > { %p2370_p9 = pneg %p2369_p8 }
 0x718   : > { %p2375_p13 = pnand %p2374_p12, %p2370_p9 }
 0x71a   : > { %2378 = shalt.err (!%p2375_p13)
}
 0x71b   : > { %2237 = dma.vmem_to_hbm [thread:$0]  (%p2505_p5), %s2000_s10, 128, %s1997_s23, %s1986_s17  }
 0x71c PF: > { %p2243_p0 = scmp.ge.s32.totalorder %s2413_s30, 2  ;;  %s2011_s13 = sand.u32 1, %s2401_s27  }
 0x71d   : > { %s2012_s18 = scalar_lea.sflag [#allocation3], %s2011_s13 }
 0x71e   : > { %p2240_p1 = pnand %p2243_p0, %p2509_p6 }
 0x720   : > { %p2241_p2 = pneg %p2240_p1 }
 0x722   : > { %2396 = dma.done.wait (%p2241_p2), %s2012_s18, 128  }
 0x723   : > { %2398 = vsyncadd (%p2241_p2), %s2012_s18, 4294967168  ;;  %p18_p3 = scmp.ge.s32.totalorder %s2492_s11, 4   ;;  %s3049_s27 = smov %s2405_s28 }
 0x724   : > { %s3050_s28 = smov %s2409_s29  ;;  %s3051_s29 = smov %s2503_s14 }
 0x725   : > { %s3052_s30 = smov %s2492_s11  ;;  %20 = sbr.rel (!%p18_p3) target bundleno = 3 (0x3), region = 96 }
 0x72a   :  { %2017 = vsyncpa [#allocation3], 1 }
 0x72b   :  { %2019 = vsyncpa [#allocation3 + $0x1], 1 }

</bundles_post_ra>
